<compile_context>
chip_gen: v6e
topology: v6e:2x2x1
jax: 0.10.0
libtpu: 0.0.40
codegen_flags: <defaults>
</compile_context>

<pallas_src>
from functools import partial

import jax
import jax.numpy as jnp
from jax.experimental import pallas as pl
from jax.experimental.pallas import tpu as pltpu

_EPS = 1e-5


def _make_kernel(N, H, W, Cin, Ce, Co, stride, shortcut_mode):
    S = H * W
    L = N * S
    Ho = (H + 2 - 3) // stride + 1
    Wo = (W + 2 - 3) // stride + 1
    So = Ho * Wo
    Lo = N * So

    def bn_train(t, g_ref, b_ref, cnt, relu6=True):
        # t: (C, rows) f32.  Training-mode BatchNorm over rows, single pass
        # (sum + sum-of-squares, biased variance), folded into one scale/shift.
        s1 = jnp.sum(t, axis=1, keepdims=True)
        s2 = jnp.sum(t * t, axis=1, keepdims=True)
        inv = 1.0 / cnt                                   # Python constant at trace time
        mean = s1 * inv
        var = s2 * inv - mean * mean
        scale = g_ref[...] * jax.lax.rsqrt(var + _EPS)    # EUP
        shift = b_ref[...] - mean * scale
        y = t * scale + shift
        if relu6:
            y = jnp.minimum(jnp.maximum(y, 0.0), 6.0)
        return y

    def kernel(x_ref, w1_ref, g1_ref, b1_ref, wdw_ref, w2_ref, g2_ref, b2_ref,
               ws_ref, gs_ref, bs_ref, mask_ref, sel_ref, out_ref):
        cdt = w1_ref.dtype  # boundary / MXU-input dtype (f32 or bf16); accum is f32

        # channels-first flat view: x_cf[ci, n*S + s] = x[n, ci, s]   (aligned concat)
        x_cf = jnp.concatenate([x_ref[n] for n in range(N)], axis=1)      # (Cin, L)

        # ---- conv1_1 (1x1, no bias) -> bn1 -> relu6 ---------------------------------
        t1 = jnp.dot(w1_ref[...], x_cf, preferred_element_type=jnp.float32)
        h1 = bn_train(t1, g1_ref, b1_ref, float(L)).astype(cdt)           # (Ce, L)

        # ---- grouped 3x3 conv (groups=out_c, padding=1) as ONE im2col matmul --------
        # patch_t[ci, l] = h1[ci, l + (kh-1)*W + (kw-1)]  (0 outside the image),
        # built with lane rotations + precomputed validity masks (no scratch buffer).
        # The center tap (kh=kw=1) is always in-image: no roll, no mask multiply.
        patches = []
        j = 0                                       # row index into the 8-row mask table
        for kh in range(3):
            for kw in range(3):
                if kh == 1 and kw == 1:
                    patches.append(h1)
                    continue
                d = (kh - 1) * W + (kw - 1)
                rolled = h1 if d == 0 else pltpu.roll(h1, shift=(-d) % L, axis=1)
                patches.append(mask_ref[j:j + 1, :] * rolled)
                j += 1
        im2col = jnp.concatenate(patches, axis=0)                         # (9*Ce, L)
        dwo = jnp.dot(wdw_ref[...], im2col.astype(cdt),
                      preferred_element_type=jnp.float32)                 # (Ce, L)

        if stride > 1:
            # TODO(synk): toy-scale fallback; real shapes should decimate with strided
            # ref reads instead of a dense selection matmul.
            dwo = jnp.dot(dwo.astype(cdt), sel_ref[...],
                          preferred_element_type=jnp.float32)             # (Ce, Lo)

        # ---- bn1 re-applied (fresh batch stats, as in the module) -> relu6 ----------
        h2 = bn_train(dwo, g1_ref, b1_ref, float(Lo)).astype(cdt)         # (Ce, Lo)

        # ---- conv1_2 (1x1, no bias) -> bn2 ------------------------------------------
        t2 = jnp.dot(w2_ref[...], h2, preferred_element_type=jnp.float32)
        y = bn_train(t2, g2_ref, b2_ref, float(Lo), relu6=False)          # (Co, Lo)

        # ---- shortcut ---------------------------------------------------------------
        if stride == 1:
            if shortcut_mode == "conv":          # 1x1 conv + BN shortcut
                sc = jnp.dot(ws_ref[...], x_cf,
                             preferred_element_type=jnp.float32)
                y = y + bn_train(sc, gs_ref, bs_ref, float(L), relu6=False)
            elif shortcut_mode == "identity":
                y = y + x_cf.astype(jnp.float32)

        # ---- lane-dense store: out[n] = y[:, n*So:(n+1)*So] -------------------------
        for n in range(N):
            out_ref[n, :, :] = y[:, n * So:(n + 1) * So].astype(out_ref.dtype)

    return kernel


@partial(jax.jit,
         static_argnames=("inp_c", "out_c", "stride", "expand", "compute_dtype"))
def invert_residual_pallas(x_nchw, p, *, inp_c, out_c, stride, expand,
                           compute_dtype=jnp.float32):
    N, Cin, H, W = x_nchw.shape
    assert Cin == inp_c
    Ce, Co = out_c * expand, out_c
    Ho = (H + 2 - 3) // stride + 1
    Wo = (W + 2 - 3) // stride + 1
    S, So = H * W, Ho * Wo
    L, Lo = N * S, N * So
    cdt = compute_dtype

    # NCHW -> (N, Cin, H*W): a free, contiguous reshape (no transpose).
    x = x_nchw.reshape(N, Cin, S).astype(cdt)

    # 1x1 convs: PyTorch OIHW (O, I, 1, 1) -> (O, I), used directly (channels-first).
    w1 = p["conv1_1"][:, :, 0, 0].astype(cdt)                             # (Ce, Cin)
    w2 = p["conv1_2"][:, :, 0, 0].astype(cdt)                             # (Co, Ce)

    # Grouped 3x3 conv -> im2col weight (Ce, 9*Ce) via a one-hot einsum (no scatter
    # loop):  w_im2col[co, t*Ce + ci] = wd[co, e, t]  where ci == (co//expand)*expand+e.
    wd = p["deepwide"].astype(jnp.float32)                                # (Ce, expand, 3, 3)
    co_i, ci_i, e_i = jnp.arange(Ce), jnp.arange(Ce), jnp.arange(expand)
    onehot = ((co_i[:, None, None] // expand) * expand + e_i[None, None, :]
              == ci_i[None, :, None]).astype(jnp.float32)                 # (Ce, Ce, expand)
    w_full = jnp.einsum('cie,cet->tci', onehot, wd.reshape(Ce, expand, 9))
    w_im2col = jnp.transpose(w_full, (1, 0, 2)).reshape(Ce, 9 * Ce).astype(cdt)

    # Per-tap validity masks for the padded 3x3 halo, 8 non-center taps -> (8, L),
    # exactly one (8, 128k) sublane tile in VMEM.
    l = jnp.arange(L)
    r = (l % S) // W
    c = l % W
    taps_nc = [(kh - 1, kw - 1) for kh in range(3) for kw in range(3)
               if not (kh == 1 and kw == 1)]
    dh = jnp.array([t[0] for t in taps_nc], jnp.int32)                    # (8,)
    dw = jnp.array([t[1] for t in taps_nc], jnp.int32)                    # (8,)
    masks = ((r[None, :] + dh[:, None] >= 0) & (r[None, :] + dh[:, None] < H) &
             (c[None, :] + dw[:, None] >= 0) & (c[None, :] + dw[:, None] < W)
             ).astype(cdt)                                                # (8, L)

    # BatchNorm affine params stay f32 (BN math is always f32 inside the kernel).
    g1 = p["bn1_w"].reshape(Ce, 1).astype(jnp.float32)
    b1 = p["bn1_b"].reshape(Ce, 1).astype(jnp.float32)
    g2 = p["bn2_w"].reshape(Co, 1).astype(jnp.float32)
    b2 = p["bn2_b"].reshape(Co, 1).astype(jnp.float32)

    if stride == 1 and inp_c != out_c:
        shortcut_mode = "conv"
        ws = p["sc_conv"][:, :, 0, 0].astype(cdt)                         # (Co, Cin)
        gs = p["sc_bn_w"].reshape(Co, 1).astype(jnp.float32)
        bs = p["sc_bn_b"].reshape(Co, 1).astype(jnp.float32)
    else:
        shortcut_mode = "identity" if stride == 1 else "none"
        ws = jnp.zeros((1, 1), cdt)
        gs = jnp.zeros((1, 1), jnp.float32)
        bs = jnp.zeros((1, 1), jnp.float32)

    if stride > 1:
        o = jnp.arange(Lo)
        n_o, i_o, j_o = o // So, (o % So) // Wo, o % Wo
        src = n_o * S + (i_o * stride) * W + (j_o * stride)
        sel = (jnp.arange(L)[:, None] == src[None, :]).astype(cdt)        # (L, Lo)
    else:
        sel = jnp.zeros((1, 1), cdt)

    kernel = _make_kernel(N, H, W, Cin, Ce, Co, stride, shortcut_mode)
    args = (x, w1, g1, b1, w_im2col, w2, g2, b2, ws, gs, bs, masks, sel)

    flops = (2 * L * Cin * Ce                 # conv1_1
             + 2 * L * (9 * Ce) * Ce          # grouped conv as im2col matmul
             + 2 * Lo * Ce * Co               # conv1_2
             + (2 * L * Cin * Co if shortcut_mode == "conv" else 0)
             + 40 * L * Ce)                   # BN / relu6 / masking elementwise
    bytes_accessed = (sum(int(a.size) * int(a.dtype.itemsize) for a in args)
                      + Lo * Co * 4)
    transcendentals = 2 * Ce + 2 * Co         # rsqrt per BN channel

    out_cf = pl.pallas_call(
        kernel,
        out_shape=jax.ShapeDtypeStruct((N, Co, So), jnp.float32),
        in_specs=[pl.BlockSpec(memory_space=pltpu.MemorySpace.VMEM)] * len(args),
        out_specs=pl.BlockSpec(memory_space=pltpu.MemorySpace.VMEM),
        compiler_params=pltpu.CompilerParams(vmem_limit_bytes=64 * 1024 * 1024),
        cost_estimate=pl.CostEstimate(flops=int(flops),
                                      transcendentals=int(transcendentals),
                                      bytes_accessed=int(bytes_accessed)),
    )(*args)

    # (N, Co, Ho*Wo) -> NCHW: another free, contiguous reshape (no transpose).
    return out_cf.reshape(N, Co, Ho, Wo)


# --------------------- pure-JAX reference (NCHW, like PyTorch) ---------------------
def invert_residual_ref(x, p, *, inp_c, out_c, stride, expand):
    def conv(x, w, s=1, pad="VALID", groups=1):
        return jax.lax.conv_general_dilated(
            x, w, (s, s), pad,
            dimension_numbers=("NCHW", "OIHW", "NCHW"),
            feature_group_count=groups)

    def bn(x, g, b):
        mean = jnp.mean(x, axis=(0, 2, 3), keepdims=True)
        var = jnp.mean((x - mean) ** 2, axis=(0, 2, 3), keepdims=True)
        return ((x - mean) / jnp.sqrt(var + _EPS)) * g.reshape(1, -1, 1, 1) \
            + b.reshape(1, -1, 1, 1)

    relu6 = lambda t: jnp.clip(t, 0.0, 6.0)

    h = relu6(bn(conv(x, p["conv1_1"]), p["bn1_w"], p["bn1_b"]))
    h = conv(h, p["deepwide"], s=stride, pad=((1, 1), (1, 1)), groups=out_c)
    h = relu6(bn(h, p["bn1_w"], p["bn1_b"]))
    y = bn(conv(h, p["conv1_2"]), p["bn2_w"], p["bn2_b"])
    if stride == 1:
        if inp_c != out_c:
            sc = bn(conv(x, p["sc_conv"]), p["sc_bn_w"], p["sc_bn_b"])
        else:
            sc = x
        y = y + sc
    return y


if __name__ == "__main__":
    # Module-consistent config: InvertResidual(inp_c=4, out_c=8, stride=1, expand=2)
    N, inp_c, H, W = 2, 4, 16, 16
    out_c, stride, expand = 8, 1, 2
    Ce = out_c * expand

    key = jax.random.PRNGKey(0)
    ks = jax.random.split(key, 6)
    x = jax.random.normal(ks[0], (N, inp_c, H, W), jnp.float32)

    params = {
        # conv weights in PyTorch OIHW layout, deterministic init
        "conv1_1": 0.2 * jax.random.normal(ks[1], (Ce, inp_c, 1, 1), jnp.float32),
        "deepwide": 0.2 * jax.random.normal(ks[2], (Ce, expand, 3, 3), jnp.float32),
        "conv1_2": 0.2 * jax.random.normal(ks[3], (out_c, Ce, 1, 1), jnp.float32),
        "sc_conv": 0.2 * jax.random.normal(ks[4], (out_c, inp_c, 1, 1), jnp.float32),
        # BatchNorm affine params at PyTorch init values (weight=1, bias=0)
        "bn1_w": jnp.ones((Ce,), jnp.float32),
        "bn1_b": jnp.zeros((Ce,), jnp.float32),
        "bn2_w": jnp.ones((out_c,), jnp.float32),
        "bn2_b": jnp.zeros((out_c,), jnp.float32),
        "sc_bn_w": jnp.ones((out_c,), jnp.float32),
        "sc_bn_b": jnp.zeros((out_c,), jnp.float32),
    }

    ref = invert_residual_ref(x, params, inp_c=inp_c, out_c=out_c,
                              stride=stride, expand=expand)
    ref = jax.block_until_ready(ref)

    # f32 boundary dtype: strict check against the f32 reference.
    out = invert_residual_pallas(x, params, inp_c=inp_c, out_c=out_c,
                                 stride=stride, expand=expand,
                                 compute_dtype=jnp.float32)
    out = jax.block_until_ready(out)
    assert out.shape == ref.shape == (N, out_c, H // stride, W // stride)
    assert jnp.allclose(out, ref, atol=1e-4, rtol=1e-4), \
        f"f32 max abs err = {jnp.max(jnp.abs(out - ref))}"

    # bf16 boundary dtype (halved HBM traffic / VMEM footprint): loose smoke check
    # (bf16 rounding propagated through three training-mode BatchNorms).
    out_bf16 = invert_residual_pallas(x, params, inp_c=inp_c, out_c=out_c,
                                      stride=stride, expand=expand,
                                      compute_dtype=jnp.bfloat16)
    out_bf16 = jax.block_until_ready(out_bf16)
    rel_l2 = jnp.sqrt(jnp.sum((out_bf16 - ref) ** 2) / jnp.sum(ref ** 2))
    assert bool(jnp.isfinite(out_bf16).all()), "bf16 output has non-finite values"
    assert float(rel_l2) < 0.08, f"bf16 relative L2 error = {float(rel_l2)}"

    print("KERNEL_OK")
</pallas_src>

<mosaic_0001>
module attributes {stable_mosaic.version = 11 : i64} {
  func.func @kernel(%arg0: memref<2x4x256xf32, #tpu.memory_space<vmem>>, %arg1: memref<16x4xf32, #tpu.memory_space<vmem>>, %arg2: memref<16x1xf32, #tpu.memory_space<vmem>>, %arg3: memref<16x1xf32, #tpu.memory_space<vmem>>, %arg4: memref<16x144xf32, #tpu.memory_space<vmem>>, %arg5: memref<8x16xf32, #tpu.memory_space<vmem>>, %arg6: memref<8x1xf32, #tpu.memory_space<vmem>>, %arg7: memref<8x1xf32, #tpu.memory_space<vmem>>, %arg8: memref<8x4xf32, #tpu.memory_space<vmem>>, %arg9: memref<8x1xf32, #tpu.memory_space<vmem>>, %arg10: memref<8x1xf32, #tpu.memory_space<vmem>>, %arg11: memref<8x512xf32, #tpu.memory_space<vmem>>, %arg12: memref<1x1xf32, #tpu.memory_space<vmem>>, %arg13: memref<2x8x256xf32, #tpu.memory_space<vmem>>) attributes {dimension_semantics = [], scalar_prefetch = 0 : i64, scratch_operands = 0 : i64, tpu.core_type = #tpu.core_type<tc>} {
    %c0 = arith.constant 0 : index
    %c0_0 = arith.constant 0 : index
    %c0_1 = arith.constant 0 : index
    %0 = vector.load %arg0[%c0, %c0_0, %c0_1] : memref<2x4x256xf32, #tpu.memory_space<vmem>>, vector<1x4x256xf32>
    %1 = vector.shape_cast %0 : vector<1x4x256xf32> to vector<4x256xf32>
    %c1 = arith.constant 1 : index
    %c0_2 = arith.constant 0 : index
    %c0_3 = arith.constant 0 : index
    %2 = vector.load %arg0[%c1, %c0_2, %c0_3] : memref<2x4x256xf32, #tpu.memory_space<vmem>>, vector<1x4x256xf32>
    %3 = vector.shape_cast %2 : vector<1x4x256xf32> to vector<4x256xf32>
    %4 = tpu.concatenate %1, %3 in 1 : vector<4x256xf32>, vector<4x256xf32> -> vector<4x512xf32>
    %c0_4 = arith.constant 0 : index
    %c0_5 = arith.constant 0 : index
    %5 = vector.load %arg1[%c0_4, %c0_5] : memref<16x4xf32, #tpu.memory_space<vmem>>, vector<16x4xf32>
    %cst = arith.constant dense<0.000000e+00> : vector<16x512xf32>
    %6 = tpu.matmul %5, %4, %cst {dimension_numbers = #tpu.dot_dimension_numbers<[1], [0], [0], [1], [0, 0, 1, 1], [], []>} : vector<16x4xf32>, vector<4x512xf32>, vector<16x512xf32> -> vector<16x512xf32>
    %cst_6 = arith.constant dense<0.000000e+00> : vector<16xf32>
    %7 = vector.multi_reduction <add>, %6, %cst_6 [1] : vector<16x512xf32> to vector<16xf32>
    %8 = vector.shape_cast %7 : vector<16xf32> to vector<16x1xf32>
    %9 = arith.mulf %6, %6 : vector<16x512xf32>
    %cst_7 = arith.constant dense<0.000000e+00> : vector<16xf32>
    %10 = vector.multi_reduction <add>, %9, %cst_7 [1] : vector<16x512xf32> to vector<16xf32>
    %11 = vector.shape_cast %10 : vector<16xf32> to vector<16x1xf32>
    %cst_8 = arith.constant 0.001953125 : f32
    %12 = vector.broadcast %cst_8 : f32 to vector<16x1xf32>
    %13 = arith.mulf %8, %12 : vector<16x1xf32>
    %cst_9 = arith.constant 0.001953125 : f32
    %14 = vector.broadcast %cst_9 : f32 to vector<16x1xf32>
    %15 = arith.mulf %11, %14 : vector<16x1xf32>
    %16 = arith.mulf %13, %13 : vector<16x1xf32>
    %17 = arith.subf %15, %16 : vector<16x1xf32>
    %c0_10 = arith.constant 0 : index
    %c0_11 = arith.constant 0 : index
    %18 = vector.load %arg2[%c0_10, %c0_11] : memref<16x1xf32, #tpu.memory_space<vmem>>, vector<16x1xf32>
    %cst_12 = arith.constant 9.99999974E-6 : f32
    %19 = vector.broadcast %cst_12 : f32 to vector<16x1xf32>
    %20 = arith.addf %17, %19 : vector<16x1xf32>
    %21 = math.rsqrt %20 : vector<16x1xf32>
    %22 = arith.mulf %18, %21 : vector<16x1xf32>
    %c0_13 = arith.constant 0 : index
    %c0_14 = arith.constant 0 : index
    %23 = vector.load %arg3[%c0_13, %c0_14] : memref<16x1xf32, #tpu.memory_space<vmem>>, vector<16x1xf32>
    %24 = arith.mulf %13, %22 : vector<16x1xf32>
    %25 = arith.subf %23, %24 : vector<16x1xf32>
    %26 = vector.broadcast %22 : vector<16x1xf32> to vector<16x512xf32>
    %27 = arith.mulf %6, %26 : vector<16x512xf32>
    %28 = vector.broadcast %25 : vector<16x1xf32> to vector<16x512xf32>
    %29 = arith.addf %27, %28 : vector<16x512xf32>
    %cst_15 = arith.constant 0.000000e+00 : f32
    %30 = vector.broadcast %cst_15 : f32 to vector<16x512xf32>
    %31 = arith.maximumf %29, %30 : vector<16x512xf32>
    %cst_16 = arith.constant 6.000000e+00 : f32
    %32 = vector.broadcast %cst_16 : f32 to vector<16x512xf32>
    %33 = arith.minimumf %31, %32 : vector<16x512xf32>
    %c17_i32 = arith.constant 17 : i32
    %34 = tpu.dynamic_rotate %33 by %c17_i32 dim 1 : vector<16x512xf32>, i32 -> vector<16x512xf32>
    %c0_17 = arith.constant 0 : index
    %c0_18 = arith.constant 0 : index
    %35 = vector.load %arg11[%c0_17, %c0_18] : memref<8x512xf32, #tpu.memory_space<vmem>>, vector<1x512xf32>
    %36 = vector.broadcast %35 : vector<1x512xf32> to vector<16x512xf32>
    %37 = arith.mulf %36, %34 : vector<16x512xf32>
    %c16_i32 = arith.constant 16 : i32
    %38 = tpu.dynamic_rotate %33 by %c16_i32 dim 1 : vector<16x512xf32>, i32 -> vector<16x512xf32>
    %c1_19 = arith.constant 1 : index
    %c0_20 = arith.constant 0 : index
    %39 = vector.load %arg11[%c1_19, %c0_20] : memref<8x512xf32, #tpu.memory_space<vmem>>, vector<1x512xf32>
    %40 = vector.broadcast %39 : vector<1x512xf32> to vector<16x512xf32>
    %41 = arith.mulf %40, %38 : vector<16x512xf32>
    %c15_i32 = arith.constant 15 : i32
    %42 = tpu.dynamic_rotate %33 by %c15_i32 dim 1 : vector<16x512xf32>, i32 -> vector<16x512xf32>
    %c2 = arith.constant 2 : index
    %c0_21 = arith.constant 0 : index
    %43 = vector.load %arg11[%c2, %c0_21] : memref<8x512xf32, #tpu.memory_space<vmem>>, vector<1x512xf32>
    %44 = vector.broadcast %43 : vector<1x512xf32> to vector<16x512xf32>
    %45 = arith.mulf %44, %42 : vector<16x512xf32>
    %c1_i32 = arith.constant 1 : i32
    %46 = tpu.dynamic_rotate %33 by %c1_i32 dim 1 : vector<16x512xf32>, i32 -> vector<16x512xf32>
    %c3 = arith.constant 3 : index
    %c0_22 = arith.constant 0 : index
    %47 = vector.load %arg11[%c3, %c0_22] : memref<8x512xf32, #tpu.memory_space<vmem>>, vector<1x512xf32>
    %48 = vector.broadcast %47 : vector<1x512xf32> to vector<16x512xf32>
    %49 = arith.mulf %48, %46 : vector<16x512xf32>
    %c511_i32 = arith.constant 511 : i32
    %50 = tpu.dynamic_rotate %33 by %c511_i32 dim 1 : vector<16x512xf32>, i32 -> vector<16x512xf32>
    %c4 = arith.constant 4 : index
    %c0_23 = arith.constant 0 : index
    %51 = vector.load %arg11[%c4, %c0_23] : memref<8x512xf32, #tpu.memory_space<vmem>>, vector<1x512xf32>
    %52 = vector.broadcast %51 : vector<1x512xf32> to vector<16x512xf32>
    %53 = arith.mulf %52, %50 : vector<16x512xf32>
    %c497_i32 = arith.constant 497 : i32
    %54 = tpu.dynamic_rotate %33 by %c497_i32 dim 1 : vector<16x512xf32>, i32 -> vector<16x512xf32>
    %c5 = arith.constant 5 : index
    %c0_24 = arith.constant 0 : index
    %55 = vector.load %arg11[%c5, %c0_24] : memref<8x512xf32, #tpu.memory_space<vmem>>, vector<1x512xf32>
    %56 = vector.broadcast %55 : vector<1x512xf32> to vector<16x512xf32>
    %57 = arith.mulf %56, %54 : vector<16x512xf32>
    %c496_i32 = arith.constant 496 : i32
    %58 = tpu.dynamic_rotate %33 by %c496_i32 dim 1 : vector<16x512xf32>, i32 -> vector<16x512xf32>
    %c6 = arith.constant 6 : index
    %c0_25 = arith.constant 0 : index
    %59 = vector.load %arg11[%c6, %c0_25] : memref<8x512xf32, #tpu.memory_space<vmem>>, vector<1x512xf32>
    %60 = vector.broadcast %59 : vector<1x512xf32> to vector<16x512xf32>
    %61 = arith.mulf %60, %58 : vector<16x512xf32>
    %c495_i32 = arith.constant 495 : i32
    %62 = tpu.dynamic_rotate %33 by %c495_i32 dim 1 : vector<16x512xf32>, i32 -> vector<16x512xf32>
    %c7 = arith.constant 7 : index
    %c0_26 = arith.constant 0 : index
    %63 = vector.load %arg11[%c7, %c0_26] : memref<8x512xf32, #tpu.memory_space<vmem>>, vector<1x512xf32>
    %64 = vector.broadcast %63 : vector<1x512xf32> to vector<16x512xf32>
    %65 = arith.mulf %64, %62 : vector<16x512xf32>
    %66 = tpu.concatenate %37, %41, %45, %49, %33, %53, %57, %61, %65 in 0 : vector<16x512xf32>, vector<16x512xf32>, vector<16x512xf32>, vector<16x512xf32>, vector<16x512xf32>, vector<16x512xf32>, vector<16x512xf32>, vector<16x512xf32>, vector<16x512xf32> -> vector<144x512xf32>
    %c0_27 = arith.constant 0 : index
    %c0_28 = arith.constant 0 : index
    %67 = vector.load %arg4[%c0_27, %c0_28] : memref<16x144xf32, #tpu.memory_space<vmem>>, vector<16x144xf32>
    %cst_29 = arith.constant dense<0.000000e+00> : vector<16x512xf32>
    %68 = tpu.matmul %67, %66, %cst_29 {dimension_numbers = #tpu.dot_dimension_numbers<[1], [0], [0], [1], [0, 0, 1, 1], [], []>} : vector<16x144xf32>, vector<144x512xf32>, vector<16x512xf32> -> vector<16x512xf32>
    %cst_30 = arith.constant dense<0.000000e+00> : vector<16xf32>
    %69 = vector.multi_reduction <add>, %68, %cst_30 [1] : vector<16x512xf32> to vector<16xf32>
    %70 = vector.shape_cast %69 : vector<16xf32> to vector<16x1xf32>
    %71 = arith.mulf %68, %68 : vector<16x512xf32>
    %cst_31 = arith.constant dense<0.000000e+00> : vector<16xf32>
    %72 = vector.multi_reduction <add>, %71, %cst_31 [1] : vector<16x512xf32> to vector<16xf32>
    %73 = vector.shape_cast %72 : vector<16xf32> to vector<16x1xf32>
    %cst_32 = arith.constant 0.001953125 : f32
    %74 = vector.broadcast %cst_32 : f32 to vector<16x1xf32>
    %75 = arith.mulf %70, %74 : vector<16x1xf32>
    %cst_33 = arith.constant 0.001953125 : f32
    %76 = vector.broadcast %cst_33 : f32 to vector<16x1xf32>
    %77 = arith.mulf %73, %76 : vector<16x1xf32>
    %78 = arith.mulf %75, %75 : vector<16x1xf32>
    %79 = arith.subf %77, %78 : vector<16x1xf32>
    %c0_34 = arith.constant 0 : index
    %c0_35 = arith.constant 0 : index
    %80 = vector.load %arg2[%c0_34, %c0_35] : memref<16x1xf32, #tpu.memory_space<vmem>>, vector<16x1xf32>
    %cst_36 = arith.constant 9.99999974E-6 : f32
    %81 = vector.broadcast %cst_36 : f32 to vector<16x1xf32>
    %82 = arith.addf %79, %81 : vector<16x1xf32>
    %83 = math.rsqrt %82 : vector<16x1xf32>
    %84 = arith.mulf %80, %83 : vector<16x1xf32>
    %c0_37 = arith.constant 0 : index
    %c0_38 = arith.constant 0 : index
    %85 = vector.load %arg3[%c0_37, %c0_38] : memref<16x1xf32, #tpu.memory_space<vmem>>, vector<16x1xf32>
    %86 = arith.mulf %75, %84 : vector<16x1xf32>
    %87 = arith.subf %85, %86 : vector<16x1xf32>
    %88 = vector.broadcast %84 : vector<16x1xf32> to vector<16x512xf32>
    %89 = arith.mulf %68, %88 : vector<16x512xf32>
    %90 = vector.broadcast %87 : vector<16x1xf32> to vector<16x512xf32>
    %91 = arith.addf %89, %90 : vector<16x512xf32>
    %cst_39 = arith.constant 0.000000e+00 : f32
    %92 = vector.broadcast %cst_39 : f32 to vector<16x512xf32>
    %93 = arith.maximumf %91, %92 : vector<16x512xf32>
    %cst_40 = arith.constant 6.000000e+00 : f32
    %94 = vector.broadcast %cst_40 : f32 to vector<16x512xf32>
    %95 = arith.minimumf %93, %94 : vector<16x512xf32>
    %c0_41 = arith.constant 0 : index
    %c0_42 = arith.constant 0 : index
    %96 = vector.load %arg5[%c0_41, %c0_42] : memref<8x16xf32, #tpu.memory_space<vmem>>, vector<8x16xf32>
    %cst_43 = arith.constant dense<0.000000e+00> : vector<8x512xf32>
    %97 = tpu.matmul %96, %95, %cst_43 {dimension_numbers = #tpu.dot_dimension_numbers<[1], [0], [0], [1], [0, 0, 1, 1], [], []>} : vector<8x16xf32>, vector<16x512xf32>, vector<8x512xf32> -> vector<8x512xf32>
    %cst_44 = arith.constant dense<0.000000e+00> : vector<8xf32>
    %98 = vector.multi_reduction <add>, %97, %cst_44 [1] : vector<8x512xf32> to vector<8xf32>
    %99 = vector.shape_cast %98 : vector<8xf32> to vector<8x1xf32>
    %100 = arith.mulf %97, %97 : vector<8x512xf32>
    %cst_45 = arith.constant dense<0.000000e+00> : vector<8xf32>
    %101 = vector.multi_reduction <add>, %100, %cst_45 [1] : vector<8x512xf32> to vector<8xf32>
    %102 = vector.shape_cast %101 : vector<8xf32> to vector<8x1xf32>
    %cst_46 = arith.constant 0.001953125 : f32
    %103 = vector.broadcast %cst_46 : f32 to vector<8x1xf32>
    %104 = arith.mulf %99, %103 : vector<8x1xf32>
    %cst_47 = arith.constant 0.001953125 : f32
    %105 = vector.broadcast %cst_47 : f32 to vector<8x1xf32>
    %106 = arith.mulf %102, %105 : vector<8x1xf32>
    %107 = arith.mulf %104, %104 : vector<8x1xf32>
    %108 = arith.subf %106, %107 : vector<8x1xf32>
    %c0_48 = arith.constant 0 : index
    %c0_49 = arith.constant 0 : index
    %109 = vector.load %arg6[%c0_48, %c0_49] : memref<8x1xf32, #tpu.memory_space<vmem>>, vector<8x1xf32>
    %cst_50 = arith.constant 9.99999974E-6 : f32
    %110 = vector.broadcast %cst_50 : f32 to vector<8x1xf32>
    %111 = arith.addf %108, %110 : vector<8x1xf32>
    %112 = math.rsqrt %111 : vector<8x1xf32>
    %113 = arith.mulf %109, %112 : vector<8x1xf32>
    %c0_51 = arith.constant 0 : index
    %c0_52 = arith.constant 0 : index
    %114 = vector.load %arg7[%c0_51, %c0_52] : memref<8x1xf32, #tpu.memory_space<vmem>>, vector<8x1xf32>
    %115 = arith.mulf %104, %113 : vector<8x1xf32>
    %116 = arith.subf %114, %115 : vector<8x1xf32>
    %117 = vector.broadcast %113 : vector<8x1xf32> to vector<8x512xf32>
    %118 = arith.mulf %97, %117 : vector<8x512xf32>
    %119 = vector.broadcast %116 : vector<8x1xf32> to vector<8x512xf32>
    %120 = arith.addf %118, %119 : vector<8x512xf32>
    %c0_53 = arith.constant 0 : index
    %c0_54 = arith.constant 0 : index
    %121 = vector.load %arg8[%c0_53, %c0_54] : memref<8x4xf32, #tpu.memory_space<vmem>>, vector<8x4xf32>
    %cst_55 = arith.constant dense<0.000000e+00> : vector<8x512xf32>
    %122 = tpu.matmul %121, %4, %cst_55 {dimension_numbers = #tpu.dot_dimension_numbers<[1], [0], [0], [1], [0, 0, 1, 1], [], []>} : vector<8x4xf32>, vector<4x512xf32>, vector<8x512xf32> -> vector<8x512xf32>
    %cst_56 = arith.constant dense<0.000000e+00> : vector<8xf32>
    %123 = vector.multi_reduction <add>, %122, %cst_56 [1] : vector<8x512xf32> to vector<8xf32>
    %124 = vector.shape_cast %123 : vector<8xf32> to vector<8x1xf32>
    %125 = arith.mulf %122, %122 : vector<8x512xf32>
    %cst_57 = arith.constant dense<0.000000e+00> : vector<8xf32>
    %126 = vector.multi_reduction <add>, %125, %cst_57 [1] : vector<8x512xf32> to vector<8xf32>
    %127 = vector.shape_cast %126 : vector<8xf32> to vector<8x1xf32>
    %cst_58 = arith.constant 0.001953125 : f32
    %128 = vector.broadcast %cst_58 : f32 to vector<8x1xf32>
    %129 = arith.mulf %124, %128 : vector<8x1xf32>
    %cst_59 = arith.constant 0.001953125 : f32
    %130 = vector.broadcast %cst_59 : f32 to vector<8x1xf32>
    %131 = arith.mulf %127, %130 : vector<8x1xf32>
    %132 = arith.mulf %129, %129 : vector<8x1xf32>
    %133 = arith.subf %131, %132 : vector<8x1xf32>
    %c0_60 = arith.constant 0 : index
    %c0_61 = arith.constant 0 : index
    %134 = vector.load %arg9[%c0_60, %c0_61] : memref<8x1xf32, #tpu.memory_space<vmem>>, vector<8x1xf32>
    %cst_62 = arith.constant 9.99999974E-6 : f32
    %135 = vector.broadcast %cst_62 : f32 to vector<8x1xf32>
    %136 = arith.addf %133, %135 : vector<8x1xf32>
    %137 = math.rsqrt %136 : vector<8x1xf32>
    %138 = arith.mulf %134, %137 : vector<8x1xf32>
    %c0_63 = arith.constant 0 : index
    %c0_64 = arith.constant 0 : index
    %139 = vector.load %arg10[%c0_63, %c0_64] : memref<8x1xf32, #tpu.memory_space<vmem>>, vector<8x1xf32>
    %140 = arith.mulf %129, %138 : vector<8x1xf32>
    %141 = arith.subf %139, %140 : vector<8x1xf32>
    %142 = vector.broadcast %138 : vector<8x1xf32> to vector<8x512xf32>
    %143 = arith.mulf %122, %142 : vector<8x512xf32>
    %144 = vector.broadcast %141 : vector<8x1xf32> to vector<8x512xf32>
    %145 = arith.addf %143, %144 : vector<8x512xf32>
    %146 = arith.addf %120, %145 : vector<8x512xf32>
    %147 = vector.extract_strided_slice %146 {offsets = [0, 0], sizes = [8, 256], strides = [1, 1]} : vector<8x512xf32> to vector<8x256xf32>
    %c0_65 = arith.constant 0 : index
    %c0_66 = arith.constant 0 : index
    %c0_67 = arith.constant 0 : index
    %148 = vector.load %arg13[%c0_65, %c0_66, %c0_67] : memref<2x8x256xf32, #tpu.memory_space<vmem>>, vector<1x8x256xf32>
    %149 = vector.shape_cast %148 : vector<1x8x256xf32> to vector<8x256xf32>
    %150 = vector.shape_cast %147 : vector<8x256xf32> to vector<1x8x256xf32>
    tpu.vector_store %arg13[%c0_65, %c0_66, %c0_67], %150 {strides = array<i32>} : memref<2x8x256xf32, #tpu.memory_space<vmem>>, vector<1x8x256xf32>,
    %151 = vector.extract_strided_slice %146 {offsets = [0, 256], sizes = [8, 256], strides = [1, 1]} : vector<8x512xf32> to vector<8x256xf32>
    %c1_68 = arith.constant 1 : index
    %c0_69 = arith.constant 0 : index
    %c0_70 = arith.constant 0 : index
    %152 = vector.load %arg13[%c1_68, %c0_69, %c0_70] : memref<2x8x256xf32, #tpu.memory_space<vmem>>, vector<1x8x256xf32>
    %153 = vector.shape_cast %152 : vector<1x8x256xf32> to vector<8x256xf32>
    %154 = vector.shape_cast %151 : vector<8x256xf32> to vector<1x8x256xf32>
    tpu.vector_store %arg13[%c1_68, %c0_69, %c0_70], %154 {strides = array<i32>} : memref<2x8x256xf32, #tpu.memory_space<vmem>>, vector<1x8x256xf32>,
    return
  }
}

</mosaic_0001>

<bundles_post_ra>
// kernel: invert_residual_pallas.1
= control target key start
LH: loop header
LB: loop body
LE: loop exit
PB: predicated region body
PF: predicated region fallthrough
CT: control target
= control target key end

     0   :  { %vm62_vm0 = vcmask 1043456   ;;  %v2385_v1 = vmov 0.0   ;;  %vm55_vm1 = vcmask 31744   ;;  %v1489_v35 = vmov 0   ;;  %s1492_s21 = smov 127   ;;  %s1493_s22 = smov 1   ;;  %s2371_s0 = inlined_call_operand.vmem [shape: f32[2,4,256], index: 0, kind: input, shape index: {}]   ;;  %s2372_s12 = inlined_call_operand.<no memory space> [shape: f32[1,1], index: 12, kind: input, shape index: {}]   ;;  %s2373_s1 = inlined_call_operand.vmem [shape: f32[16,4], index: 1, kind: input, shape index: {}]   ;;  %s2374_s2 = inlined_call_operand.vmem [shape: f32[16,1], index: 2, kind: input, shape index: {}]   ;;  %s2375_s3 = inlined_call_operand.vmem [shape: f32[16,1], index: 3, kind: input, shape index: {}]   ;;  %s2376_s11 = inlined_call_operand.vmem [shape: f32[8,512], index: 11, kind: input, shape index: {}]   ;;  %s2377_s4 = inlined_call_operand.vmem [shape: f32[16,144], index: 4, kind: input, shape index: {}]   ;;  %s2378_s5 = inlined_call_operand.vmem [shape: f32[8,16], index: 5, kind: input, shape index: {}]   ;;  %s2379_s8 = inlined_call_operand.vmem [shape: f32[8,4], index: 8, kind: input, shape index: {}]   ;;  %s2380_s9 = inlined_call_operand.vmem [shape: f32[8,1], index: 9, kind: input, shape index: {}]   ;;  %s2381_s6 = inlined_call_operand.vmem [shape: f32[8,1], index: 6, kind: input, shape index: {}]   ;;  %s2382_s7 = inlined_call_operand.vmem [shape: f32[8,1], index: 7, kind: input, shape index: {}]   ;;  %s2383_s10 = inlined_call_operand.vmem [shape: f32[8,1], index: 10, kind: input, shape index: {}]   ;;  %s2384_s13 = inlined_call_operand.vmem [shape: f32[2,8,256], index: 13, kind: output, shape index: {}]  }
   0x1   :  { %v46_v0 = vld [vmem:[%s2371_s0] sm:$0xff]  ;;  %135 = vmatprep.mubr.f32.mxu0 %v2385_v1  ;;  %v1430_v2 = vld [vmem:[%s2371_s0 + $0x8] sm:$0xff]  ;;  %212 = vmatprep.mubr.f32.mxu1 %v2385_v1  ;;  %s1494_s23 = smov 15   ;;  %s1495_s24 = smov 16   ;;  %vm780_vm3 = vcmask 130048  }
   0x2   :  { %v1576_v3 = vcombine.high %v46_v0, %v46_v0  ;;  %v1578_v4 = vcombine.high %v1430_v2, %v1430_v2  ;;  %v53_v5 = vld [vmem:[%s2373_s1] sm:$0xff]  ;;  %v54_v6 = vld [vmem:[%s2373_s1 + $0x8] sm:$0xff]  ;;  %1471 = vset.pattern.permute.xlu0 %v1489_v35  ;;  %1470 = vset.pattern.permute.xlu1 %v1489_v35  ;;  %s1496_s27 = smov 17   ;;  %s1497_s28 = smov 111  }
   0x3   :  { %v1641_v50 = vld [vmem:[%s2374_s2 + $0x8] sm:$0xff]  ;;  %v1647_v53 = vld [vmem:[%s2374_s2] sm:$0xff]  ;;  %s1490_s2 = smov 112  }
   0x4   :  { %2397 = vst [vmem:[#allocation3_spill] sm:$0xff] %v1576_v3  ;;  %2398 = vst [vmem:[#allocation4_spill] sm:$0xff] %v1578_v4  ;;  %1431 = vmatprep.subr.msk.mxu0 %vm62_vm0, %v1576_v3  ;;  %1435 = vmatprep.subr.msk.mxu1 %vm62_vm0, %v1578_v4  ;;  %v1653_v56 = vld [vmem:[%s2375_s3] sm:$0xff]  ;;  %v1659_v60 = vld [vmem:[%s2375_s3 + $0x8] sm:$0xff]  ;;  %s1491_s3 = smov 113  }
   0x5   :  { %1432 = vmatpush1.msk.msra.mxu0 %vm62_vm0, %v46_v0  ;;  %1436 = vmatpush1.msk.msra.mxu1 %vm62_vm0, %v1430_v2  ;;  %2399 = vst [vmem:[#allocation5_spill] sm:$0xff] %v1641_v50  ;;  %2400 = vst [vmem:[#allocation6_spill] sm:$0xff] %v1647_v53 }
   0x6   :  { %1433 = vmatmul.mubr.msk.f32.vlgmr.msra.gmra.mxu0 %vm55_vm1, %v53_v5  ;;  %1437 = vmatmul.mubr.msk.f32.vlgmr.msra.gmra.mxu1 %vm55_vm1, %v53_v5  ;;  %2401 = vst [vmem:[#allocation7_spill] sm:$0xff] %v1653_v56  ;;  %2402 = vst [vmem:[#allocation8_spill] sm:$0xff] %v1659_v60 }
   0x7   :  { %141 = vmatprep.mubr.f32.mxu0 %v2385_v1  ;;  %218 = vmatprep.mubr.f32.mxu1 %v2385_v1 }
   0xa   :  { %1434 = vmatmul.mubr.msk.f32.gmra.mxu0 %vm55_vm1, %v54_v6  ;;  %1438 = vmatmul.mubr.msk.f32.gmra.mxu1 %vm55_vm1, %v54_v6 }
  0xc6   :  { %v1598_v7 = vpop.f32.mrf.mxu0  ;;  %v1600_v8 = vpop.f32.mrf.mxu1 }
  0xc7   :  { %v235_v14 = vmul.f32 %v1598_v7, %v1598_v7  ;;  %v237_v22 = vmul.f32 %v1600_v8, %v1600_v8 }
  0xc8   :  { %v1602_v9 = vpop.f32.mrf.mxu0  ;;  %v1604_v10 = vpop.f32.mrf.mxu1 }
  0xc9   :  { %v236_v13 = vmul.f32 %v1602_v9, %v1602_v9  ;;  %v225_v15 = vadd.f32 %v1602_v9, %v1598_v7  ;;  %v238_v33 = vmul.f32 %v1604_v10, %v1604_v10 }
  0xca   :  { %v1606_v11 = vpop.f32.mrf.mxu0  ;;  %v1608_v12 = vpop.f32.mrf.mxu1 }
  0xcb   :  { %v239_v17 = vmul.f32 %v1606_v11, %v1606_v11  ;;  %v241_v20 = vmul.f32 %v1608_v12, %v1608_v12  ;;  %v243_v25 = vadd.f32 %v236_v13, %v235_v14  ;;  %v226_v29 = vadd.f32 %v225_v15, %v1600_v8 }
  0xcc   :  { %v1616_v16 = vpop.f32.mrf.mxu0  ;;  %v1626_v21 = vpop.f32.mrf.mxu1 }
  0xcd   :  { %v230_v18 = vadd.f32 %v1616_v16, %v1606_v11  ;;  %v240_v19 = vmul.f32 %v1616_v16, %v1616_v16  ;;  %v242_v27 = vmul.f32 %v1626_v21, %v1626_v21  ;;  %v244_v31 = vadd.f32 %v243_v25, %v237_v22 }
  0xce   :  { %v227_v32 = vadd.f32 %v226_v29, %v1604_v10 }
  0xcf   :  { %v231_v23 = vadd.f32 %v230_v18, %v1608_v12  ;;  %v248_v24 = vadd.f32 %v240_v19, %v239_v17  ;;  %v245_v34 = vadd.f32 %v244_v31, %v238_v33 }
  0xd1   :  { %v232_v26 = vadd.f32 %v231_v23, %v1626_v21  ;;  %v249_v28 = vadd.f32 %v248_v24, %v241_v20  ;;  %v343_v23 = vlaneseq }
  0xd3   :  { %233 = vadd.xlane.f32.xlu0 %v232_v26  ;;  %v250_v30 = vadd.f32 %v249_v28, %v242_v27  ;;  %v1715_v24 = vshrl.u32 %v343_v23, 7  ;;  %v1727_v26 = vld [vmem:[%s2376_s11 + $0x7] ss:$8 sm:$0xf] }
  0xd5   :  { %251 = vadd.xlane.f32.xlu1 %v250_v30  ;;  %v1722_v25 = vsub.s32 1, %v1715_v24 }
  0xd7   :  { %228 = vadd.xlane.f32.xlu0 %v227_v32  ;;  %v1731_v27 = vrot.slane %v1727_v26, %v1722_v25 }
  0xd9   :  { %246 = vadd.xlane.f32.xlu1 %v245_v34  ;;  %2403 = vst [vmem:[#allocation9_spill] sm:$0xff] %v1731_v27 }
 0x15c   :  { %v234_v36 = vpop.xlane.xlu0 %233 }
 0x15d   :  { %v254_v37 = vmul.f32 0.001953125, %v234_v36 }
 0x15e   :  { %v252_v38 = vpop.xlane.xlu1 %251 }
 0x15f   :  { %v258_v39 = vmul.f32 %v254_v37, %v254_v37  ;;  %v256_v40 = vmul.f32 0.001953125, %v252_v38 }
 0x160   :  { %v229_v41 = vpop.xlane.xlu0 %228 }
 0x161   :  { %v260_v42 = vsub.f32 %v256_v40, %v258_v39  ;;  %v253_v43 = vmul.f32 0.001953125, %v229_v41 }
 0x162   :  { %v247_v44 = vpop.xlane.xlu1 %246 }
 0x163   :  { %v264_v45 = vadd.f32 1e-05, %v260_v42  ;;  %v257_v46 = vmul.f32 %v253_v43, %v253_v43  ;;  %v255_v47 = vmul.f32 0.001953125, %v247_v44 }
 0x165   :  { %1474 = vrsqrt.f32 %v264_v45  ;;  %v259_v48 = vsub.f32 %v255_v47, %v257_v46 }
 0x167   :  { %v263_v49 = vadd.f32 1e-05, %v259_v48  ;;  %v777_v48 = vld [vmem:[%s2377_s4 + $0x8] sm:$0xff] }
 0x168   :  { %1446 = vmatprep.mubr.msk.f32.mxu0 %vm780_vm3, %v777_v48  ;;  %1448 = vmatprep.mubr.msk.f32.mxu1 %vm780_vm3, %v777_v48 }
 0x169   :  { %1476 = vrsqrt.f32 %v263_v49 }
 0x172   :  { %v1475_v51 = vpop.eup %1474 }
 0x173   :  { %v268_v52 = vmul.f32 %v1475_v51, %v1641_v50 }
 0x175   :  { %282 = vperm.xlu0 %1471, %v268_v52   ;;  %v272_v59 = vmul.f32 %v268_v52, %v254_v37 }
 0x176   :  { %v1477_v54 = vpop.eup %1476 }
 0x177   :  { %v267_v55 = vmul.f32 %v1477_v54, %v1647_v53  ;;  %v274_v61 = vsub.f32 %v1659_v60, %v272_v59 }
 0x179   :  { %277 = vperm.xlu1 %1470, %v267_v55   ;;  %v271_v57 = vmul.f32 %v267_v55, %v253_v43  ;;  %v1820_v43 = vand.u32 127, %v343_v23 }
 0x17b   :  { %v273_v58 = vsub.f32 %v1653_v56, %v271_v57  ;;  %vm680_vm2 = vcmp.lt.s32.totalorder %v1820_v43, 112  ;;  %vm624_vm4 = vcmp.lt.s32.totalorder %v1820_v43, 113  ;;  %vm512_vm5 = vcmp.lt.s32.totalorder %v1820_v43, 1  ;;  %v1443_v56 = vld [vmem:[%s2376_s11 + $0x5] ss:$8 sm:$0xf] }
 0x17c   :  { %vm456_vm6 = vcmp.lt.s32.totalorder %v1820_v43, 15  ;;  %vm400_vm7 = vcmp.lt.s32.totalorder %v1820_v43, 16  ;;  %vm345_vm8 = vcmp.lt.s32.totalorder %v1820_v43, 17  ;;  %vm736_vm9 = vcmp.lt.s32.totalorder %v1820_v43, 111 }
 0x17d   :  { %295 = vperm.xlu1 %1470, %v273_v58   ;;  %vm568_vm10 = vcmp.lt.s32.totalorder %v1820_v43, 127  ;;  %v778_v43 = vld [vmem:[%s2377_s4 + $0x10] sm:$0xff] }
 0x181   :  { %300 = vperm.xlu1 %1470, %v274_v61  }
 0x1f0   :  { %v283_v28 = vpop.permute.xlu0 %282 }
 0x1f1   :  { %v290_v30 = vmul.f32 %v283_v28, %v1616_v16  ;;  %v291_v31 = vmul.f32 %v283_v28, %v1608_v12  ;;  %v289_v34 = vmul.f32 %v283_v28, %v1606_v11  ;;  %v292_v39 = vmul.f32 %v283_v28, %v1626_v21 }
 0x1f4   :  { %v278_v62 = vpop.permute.xlu1 %277 }
 0x1f5   :  { %v285_v63 = vmul.f32 %v278_v62, %v1598_v7  ;;  %v286_v0 = vmul.f32 %v278_v62, %v1602_v9  ;;  %v287_v2 = vmul.f32 %v278_v62, %v1600_v8  ;;  %v288_v22 = vmul.f32 %v278_v62, %v1604_v10 }
 0x1f8   :  { %v296_v5 = vpop.permute.xlu1 %295 }
 0x1f9   :  { %v303_v6 = vadd.f32 %v296_v5, %v285_v63  ;;  %v304_v13 = vadd.f32 %v296_v5, %v286_v0  ;;  %v305_v14 = vadd.f32 %v296_v5, %v287_v2  ;;  %v306_v7 = vadd.f32 %v296_v5, %v288_v22 }
 0x1fb   :  { %v311_v15 = vmax.f32 %v303_v6, 0.0  ;;  %v312_v17 = vmax.f32 %v304_v13, 0.0  ;;  %v313_v18 = vmax.f32 %v305_v14, 0.0  ;;  %v314_v9 = vmax.f32 %v306_v7, 0.0 }
 0x1fc   :  { %v301_v29 = vpop.permute.xlu1 %300 }
 0x1fd   :  { %v1665_v19 = vmin.f32 %v311_v15, 6.0  ;;  %v1667_v20 = vmin.f32 %v312_v17, 6.0  ;;  %v1674_v8 = vmin.f32 %v313_v18, 6.0  ;;  %v1684_v10 = vmin.f32 %v314_v9, 6.0 }
 0x1fe   :  { %v308_v32 = vadd.f32 %v301_v29, %v290_v30  ;;  %v309_v33 = vadd.f32 %v301_v29, %v291_v31  ;;  %v307_v35 = vadd.f32 %v301_v29, %v289_v34  ;;  %v310_v40 = vadd.f32 %v301_v29, %v292_v39 }
 0x1ff   :  { %668 = vrot.lane.b32.xlu1 %v1667_v20, %s1490_s2  ;;  %664 = vrot.lane.b32.xlu0 %v1665_v19, %s1490_s2 }
 0x200   :  { %v316_v16 = vmax.f32 %v308_v32, 0.0  ;;  %v317_v36 = vmax.f32 %v309_v33, 0.0  ;;  %v315_v12 = vmax.f32 %v307_v35, 0.0  ;;  %v318_v41 = vmax.f32 %v310_v40, 0.0 }
 0x202   :  { %v1752_v37 = vmin.f32 %v316_v16, 6.0  ;;  %v1754_v11 = vmin.f32 %v317_v36, 6.0  ;;  %v1760_v38 = vmin.f32 %v315_v12, 6.0  ;;  %v1775_v21 = vmin.f32 %v318_v41, 6.0 }
 0x203   :  { %672 = vrot.lane.b32.xlu1 %v1674_v8, %s1490_s2  ;;  %616 = vrot.lane.b32.xlu0 %v1674_v8, %s1491_s3 }
 0x207   :  { %612 = vrot.lane.b32.xlu1 %v1667_v20, %s1491_s3  ;;  %608 = vrot.lane.b32.xlu0 %v1665_v19, %s1491_s3 }
 0x20b   :  { %676 = vrot.lane.b32.xlu1 %v1684_v10, %s1490_s2  ;;  %560 = vrot.lane.b32.xlu0 %v1674_v8, %s1492_s21 }
 0x20f   :  { %556 = vrot.lane.b32.xlu1 %v1667_v20, %s1492_s21  ;;  %552 = vrot.lane.b32.xlu0 %v1665_v19, %s1492_s21 }
 0x213   :  { %620 = vrot.lane.b32.xlu1 %v1684_v10, %s1491_s3  ;;  %564 = vrot.lane.b32.xlu0 %v1684_v10, %s1492_s21 }
 0x217   :  { %500 = vrot.lane.b32.xlu1 %v1667_v20, %s1493_s22  ;;  %496 = vrot.lane.b32.xlu0 %v1665_v19, %s1493_s22 }
 0x21b   :  { %440 = vrot.lane.b32.xlu1 %v1665_v19, %s1494_s23  ;;  %508 = vrot.lane.b32.xlu0 %v1684_v10, %s1493_s22 }
 0x21f   :  { %504 = vrot.lane.b32.xlu1 %v1674_v8, %s1493_s22  ;;  %444 = vrot.lane.b32.xlu0 %v1667_v20, %s1494_s23 }
 0x223   :  { %384 = vrot.lane.b32.xlu1 %v1665_v19, %s1495_s24  ;;  %452 = vrot.lane.b32.xlu0 %v1684_v10, %s1494_s23 }
 0x227   :  { %448 = vrot.lane.b32.xlu1 %v1674_v8, %s1494_s23  ;;  %388 = vrot.lane.b32.xlu0 %v1667_v20, %s1495_s24 }
 0x22b   :  { %327 = vrot.lane.b32.xlu1 %v1665_v19, %s1496_s27  ;;  %396 = vrot.lane.b32.xlu0 %v1684_v10, %s1495_s24 }
 0x22f   :  { %392 = vrot.lane.b32.xlu1 %v1674_v8, %s1495_s24  ;;  %331 = vrot.lane.b32.xlu0 %v1667_v20, %s1496_s27 }
 0x233   :  { %335 = vrot.lane.b32.xlu1 %v1674_v8, %s1496_s27  ;;  %339 = vrot.lane.b32.xlu0 %v1684_v10, %s1496_s27 }
 0x237   :  { %728 = vrot.lane.b32.xlu1 %v1674_v8, %s1497_s28  ;;  %724 = vrot.lane.b32.xlu0 %v1667_v20, %s1497_s28 }
 0x23b   :  { %618 = vrot.lane.b32.xlu0 %v1754_v11, %s1491_s3  ;;  %670 = vrot.lane.b32.xlu1 %v1752_v37, %s1490_s2 }
 0x23f   :  { %674 = vrot.lane.b32.xlu1 %v1754_v11, %s1490_s2  ;;  %610 = vrot.lane.b32.xlu0 %v1760_v38, %s1491_s3 }
 0x243   :  { %562 = vrot.lane.b32.xlu0 %v1754_v11, %s1492_s21  ;;  %666 = vrot.lane.b32.xlu1 %v1760_v38, %s1490_s2 }
 0x247   :  { %554 = vrot.lane.b32.xlu0 %v1760_v38, %s1492_s21  ;;  %614 = vrot.lane.b32.xlu1 %v1752_v37, %s1491_s3 }
 0x24b   :  { %502 = vrot.lane.b32.xlu0 %v1752_v37, %s1493_s22  ;;  %678 = vrot.lane.b32.xlu1 %v1775_v21, %s1490_s2 }
 0x24f   :  { %446 = vrot.lane.b32.xlu0 %v1752_v37, %s1494_s23  ;;  %558 = vrot.lane.b32.xlu1 %v1752_v37, %s1492_s21 }
 0x253   :  { %454 = vrot.lane.b32.xlu0 %v1775_v21, %s1494_s23  ;;  %622 = vrot.lane.b32.xlu1 %v1775_v21, %s1491_s3 }
 0x257   :  { %390 = vrot.lane.b32.xlu0 %v1752_v37, %s1495_s24  ;;  %566 = vrot.lane.b32.xlu1 %v1775_v21, %s1492_s21 }
 0x25b   :  { %398 = vrot.lane.b32.xlu0 %v1775_v21, %s1495_s24  ;;  %498 = vrot.lane.b32.xlu1 %v1760_v38, %s1493_s22 }
 0x25f   :  { %333 = vrot.lane.b32.xlu0 %v1752_v37, %s1496_s27  ;;  %510 = vrot.lane.b32.xlu1 %v1775_v21, %s1493_s22 }
 0x263   :  { %341 = vrot.lane.b32.xlu0 %v1775_v21, %s1496_s27  ;;  %442 = vrot.lane.b32.xlu1 %v1760_v38, %s1494_s23 }
 0x267   :  { %726 = vrot.lane.b32.xlu0 %v1752_v37, %s1497_s28  ;;  %506 = vrot.lane.b32.xlu1 %v1754_v11, %s1493_s22 }
 0x26b   :  { %722 = vrot.lane.b32.xlu0 %v1760_v38, %s1497_s28  ;;  %386 = vrot.lane.b32.xlu1 %v1760_v38, %s1495_s24 }
 0x26f   :  { %720 = vrot.lane.b32.xlu0 %v1665_v19, %s1497_s28  ;;  %450 = vrot.lane.b32.xlu1 %v1754_v11, %s1494_s23 }
 0x271   :  { %v1817_v42 = vpop.permute.xlu1 %668  ;;  %v1822_v44 = vpop.permute.xlu0 %664 }
 0x272   :  { %v685_v50 = vsel %vm680_vm2, %v1822_v44, %v1817_v42 }
 0x273   :  { %732 = vrot.lane.b32.xlu0 %v1684_v10, %s1497_s28  ;;  %329 = vrot.lane.b32.xlu1 %v1760_v38, %s1496_s27 }
 0x275   :  { %v673_v45 = vpop.permute.xlu1 %672  ;;  %v1829_v46 = vpop.permute.xlu0 %616 }
 0x276   :  { %v1834_v47 = vsel %vm680_vm2, %v1817_v42, %v673_v45 }
 0x277   :  { %394 = vrot.lane.b32.xlu1 %v1754_v11, %s1495_s24 }
 0x279   :  { %v1841_v49 = vpop.permute.xlu1 %612  ;;  %v1843_v51 = vpop.permute.xlu0 %608 }
 0x27b   :  { %337 = vrot.lane.b32.xlu1 %v1754_v11, %s1496_s27 }
 0x27d   :  { %v677_v52 = vpop.permute.xlu1 %676  ;;  %v1849_v54 = vpop.permute.xlu0 %560 }
 0x27e   :  { %v1853_v55 = vsel %vm680_vm2, %v673_v45, %v677_v52  ;;  %v1858_v57 = vsel %vm680_vm2, %v677_v52, %v1822_v44  ;;  %v627_v44 = vsel %vm624_vm4, %v1841_v49, %v1829_v46 }
 0x27f   :  { %730 = vrot.lane.b32.xlu1 %v1754_v11, %s1497_s28 }
 0x281   :  { %v1862_v58 = vpop.permute.xlu1 %556  ;;  %v1864_v59 = vpop.permute.xlu0 %552 }
 0x283   :  { %734 = vrot.lane.b32.xlu1 %v1775_v21, %s1497_s28 }
 0x285   :  { %v621_v61 = vpop.permute.xlu1 %620  ;;  %v1869_v62 = vpop.permute.xlu0 %564 }
 0x286   :  { %v1874_v63 = vsel %vm624_vm4, %v1829_v46, %v621_v61  ;;  %v1879_v0 = vsel %vm624_vm4, %v621_v61, %v1843_v51 }
 0x289   :  { %v501_v2 = vpop.permute.xlu1 %500  ;;  %v1882_v5 = vpop.permute.xlu0 %496 }
 0x28a   :  { %v1887_v6 = vsel %vm512_vm5, %v1882_v5, %v501_v2 }
 0x28d   :  { %v1889_v13 = vpop.permute.xlu1 %440  ;;  %v1891_v14 = vpop.permute.xlu0 %508 }
 0x291   :  { %v505_v15 = vpop.permute.xlu1 %504  ;;  %v1893_v17 = vpop.permute.xlu0 %444 }
 0x292   :  { %v1898_v18 = vsel %vm512_vm5, %v505_v15, %v1891_v14  ;;  %v1902_v22 = vsel %vm512_vm5, %v501_v2, %v505_v15  ;;  %v1444_v15 = vld [vmem:[%s2376_s11 + $0x6] ss:$8 sm:$0xf] }
 0x295   :  { %v1904_v7 = vpop.permute.xlu1 %384  ;;  %v1906_v9 = vpop.permute.xlu0 %452 }
 0x299   :  { %v449_v23 = vpop.permute.xlu1 %448  ;;  %v1909_v28 = vpop.permute.xlu0 %388 }
 0x29a   :  { %v1914_v29 = vsel %vm456_vm6, %v449_v23, %v1906_v9  ;;  %v1919_v30 = vsel %vm456_vm6, %v1893_v17, %v449_v23  ;;  %v1969_v23 = vsub.s32 0, %v1715_v24 }
 0x29c   :  { %v695_v3 = vrot.slane %v1444_v15, %v1969_v23 }
 0x29d   :  { %v1921_v31 = vpop.permute.xlu1 %327  ;;  %v1923_v32 = vpop.permute.xlu0 %396 }
 0x29e   :  { %2404 = vst [vmem:[#allocation10_spill] sm:$0xff] %v1921_v31 }
 0x2a1   :  { %v393_v33 = vpop.permute.xlu1 %392  ;;  %v1926_v34 = vpop.permute.xlu0 %331 }
 0x2a2   :  { %v1931_v35 = vsel %vm400_vm7, %v393_v33, %v1923_v32  ;;  %v1936_v16 = vsel %vm400_vm7, %v1909_v28, %v393_v33  ;;  %v699_v33 = vrot.slane %v1444_v15, %v1722_v25 }
 0x2a3   :  { %2405 = vst [vmem:[#allocation11_spill] sm:$0xff] %v1931_v35  ;;  %2406 = vst [vmem:[#allocation12_spill] sm:$0xff] %v1936_v16  ;;  %v639_v16 = vrot.slane %v1443_v56, %v1969_v23  ;;  %v1995_v35 = vsub.s32 3, %v1715_v24 }
 0x2a5   :  { %v336_v36 = vpop.permute.xlu1 %335  ;;  %v1939_v12 = vpop.permute.xlu0 %339 }
 0x2a6   :  { %2407 = vst [vmem:[#allocation13_spill] sm:$0xff] %v1939_v12  ;;  %v1944_v39 = vsel %vm345_vm8, %v1926_v34, %v336_v36  ;;  %v1949_v40 = vsel %vm345_vm8, %v336_v36, %v1939_v12 }
 0x2a7   :  { %2408 = vst [vmem:[#allocation14_spill] sm:$0xff] %v1944_v39  ;;  %2409 = vst [vmem:[#allocation15_spill] sm:$0xff] %v1949_v40  ;;  %v643_v39 = vrot.slane %v1443_v56, %v1722_v25  ;;  %v712_v40 = vmul.f32 %v695_v3, %v685_v50 }
 0x2a9   :  { %v1952_v41 = vpop.permute.xlu1 %728  ;;  %v1954_v45 = vpop.permute.xlu0 %724 }
 0x2aa   :  { %2410 = vst [vmem:[#allocation16_spill] sm:$0xff] %v1952_v41  ;;  %v739_v48 = vsel %vm736_vm9, %v1954_v45, %v1952_v41 }
 0x2ab   :  { %v1961_v52 = vmul.f32 %v1731_v27, %v739_v48 }
 0x2ad   :  { %2411 = vst [vmem:[#allocation17_spill] sm:$0xff] %v1961_v52  ;;  %v671_v61 = vpop.permute.xlu1 %670  ;;  %v1963_v2 = vpop.permute.xlu0 %618 }
 0x2b1   :  { %v675_v36 = vpop.permute.xlu1 %674  ;;  %v1972_v1 = vpop.permute.xlu0 %610 }
 0x2b2   :  { %v684_v4 = vsel %vm680_vm2, %v671_v61, %v675_v36 }
 0x2b3   :  { %v717_v48 = vmul.f32 %v699_v33, %v684_v4  ;;  %v713_v4 = vmul.f32 %v699_v33, %v1834_v47 }
 0x2b5   :  { %787 = vmatprep.subr.mxu0 %v717_v48  ;;  %v667_v60 = vpop.permute.xlu1 %666  ;;  %v1980_v53 = vpop.permute.xlu0 %562  ;;  %v1992_v48 = vsub.s32 2, %v1715_v24  ;;  %v629_v24 = vsel %vm624_vm4, %v1843_v51, %v1841_v49 }
 0x2b6   :  { %v686_v52 = vsel %vm680_vm2, %v667_v60, %v671_v61  ;;  %v707_v61 = vrot.slane %v1444_v15, %v1995_v35  ;;  %v656_v31 = vmul.f32 %v639_v16, %v629_v24 }
 0x2b7   :  { %v716_v27 = vmul.f32 %v695_v3, %v686_v52  ;;  %v657_v52 = vmul.f32 %v643_v39, %v627_v44  ;;  %v703_v46 = vrot.slane %v1444_v15, %v1992_v48 }
 0x2b8   :  { %v715_v15 = vmul.f32 %v707_v61, %v1858_v57 }
 0x2b9   :  { %788 = vmatpush1.msra.mxu0 %v716_v27  ;;  %v615_v41 = vpop.permute.xlu1 %614  ;;  %v1997_v42 = vpop.permute.xlu0 %554 }
 0x2ba   :  { %v628_v3 = vsel %vm624_vm4, %v615_v41, %v1963_v2  ;;  %v630_v50 = vsel %vm624_vm4, %v1972_v1, %v615_v41  ;;  %789 = vmatprep.subr.mxu0 %v713_v4  ;;  %v1442_v41 = vld [vmem:[%s2376_s11 + $0x4] ss:$8 sm:$0xf] }
 0x2bb   :  { %v660_v27 = vmul.f32 %v639_v16, %v630_v50  ;;  %v661_v47 = vmul.f32 %v643_v39, %v628_v3  ;;  %790 = vmatpush1.msra.mxu0 %v712_v40  ;;  %v587_v16 = vrot.slane %v1442_v41, %v1722_v25  ;;  %v583_v4 = vrot.slane %v1442_v41, %v1969_v23 }
 0x2bc   :  { %v573_v50 = vsel %vm568_vm10, %v1864_v59, %v1862_v58 }
 0x2bd   :  { %v679_v33 = vpop.permute.xlu1 %678  ;;  %791 = vmatprep.subr.mxu0 %v661_v47  ;;  %v2015_v12 = vpop.permute.xlu0 %502  ;;  %v647_v47 = vrot.slane %v1443_v56, %v1992_v48 }
 0x2be   :  { %v682_v49 = vsel %vm680_vm2, %v675_v36, %v679_v33  ;;  %v688_v51 = vsel %vm680_vm2, %v679_v33, %v667_v60  ;;  %792 = vmatpush1.msra.mxu0 %v660_v27  ;;  %v714_v36 = vmul.f32 %v703_v46, %v1853_v55  ;;  %v571_v60 = vsel %vm568_vm10, %v1862_v58, %v1849_v54 }
 0x2bf   :  { %v718_v39 = vmul.f32 %v703_v46, %v682_v49  ;;  %v719_v40 = vmul.f32 %v707_v61, %v688_v51  ;;  %793 = vmatprep.subr.mxu0 %v657_v52  ;;  %v601_v27 = vmul.f32 %v587_v16, %v571_v60  ;;  %v651_v52 = vrot.slane %v1443_v56, %v1995_v35 }
 0x2c0   :  { %794 = vmatpush1.msra.mxu0 %v656_v31  ;;  %v600_v33 = vmul.f32 %v583_v4, %v573_v50  ;;  %v1440_v50 = vld [vmem:[%s2376_s11 + $0x2] ss:$8 sm:$0xf] }
 0x2c1   :  { %864 = vmatprep.subr.mxu1 %v719_v40  ;;  %v559_v44 = vpop.permute.xlu1 %558  ;;  %v2028_v3 = vpop.permute.xlu0 %446  ;;  %v591_v40 = vrot.slane %v1442_v41, %v1992_v48  ;;  %v659_v56 = vmul.f32 %v651_v52, %v1879_v0 }
 0x2c2   :  { %v572_v31 = vsel %vm568_vm10, %v559_v44, %v1980_v53  ;;  %v574_v57 = vsel %vm568_vm10, %v1997_v42, %v559_v44  ;;  %865 = vmatpush1.msra.mxu1 %v718_v39  ;;  %v1441_v44 = vld [vmem:[%s2376_s11 + $0x3] ss:$8 sm:$0xf] }
 0x2c3   :  { %v604_v55 = vmul.f32 %v583_v4, %v574_v57  ;;  %v605_v24 = vmul.f32 %v587_v16, %v572_v31  ;;  %866 = vmatprep.subr.mxu1 %v715_v15  ;;  %v595_v15 = vrot.slane %v1442_v41, %v1995_v35  ;;  %v658_v4 = vmul.f32 %v647_v47, %v1874_v63 }
 0x2c4   :  { %867 = vmatpush1.msra.mxu1 %v714_v36  ;;  %v531_v36 = vrot.slane %v1441_v44, %v1722_v25  ;;  %v519_v57 = vsel %vm512_vm5, %v1891_v14, %v1882_v5  ;;  %v471_v5 = vrot.slane %v1440_v50, %v1969_v23 }
 0x2c5   :  { %v623_v46 = vpop.permute.xlu1 %622  ;;  %795 = vmatprep.subr.mxu0 %v605_v24  ;;  %v2047_v61 = vpop.permute.xlu0 %454 }
 0x2c6   :  { %v626_v49 = vsel %vm624_vm4, %v1963_v2, %v623_v46  ;;  %v632_v58 = vsel %vm624_vm4, %v623_v46, %v1972_v1  ;;  %796 = vmatpush1.msra.mxu0 %v604_v55  ;;  %v575_v2 = vsel %vm568_vm10, %v1869_v62, %v1864_v59 }
 0x2c7   :  { %v662_v51 = vmul.f32 %v647_v47, %v626_v49  ;;  %v663_v39 = vmul.f32 %v651_v52, %v632_v58  ;;  %797 = vmatprep.subr.mxu0 %v601_v27  ;;  %v475_v47 = vrot.slane %v1440_v50, %v1722_v25  ;;  %v535_v49 = vrot.slane %v1441_v44, %v1992_v48 }
 0x2c8   :  { %798 = vmatpush1.msra.mxu0 %v600_v33 }
 0x2c9   :  { %v567_v16 = vpop.permute.xlu1 %566  ;;  %799 = vmatprep.subr.mxu0 %v1752_v37  ;;  %868 = vmatprep.subr.mxu1 %v663_v39  ;;  %v2063_v1 = vpop.permute.xlu0 %390  ;;  %v569_v37 = vsel %vm568_vm10, %v1849_v54, %v1869_v62 }
 0x2ca   :  { %v570_v0 = vsel %vm568_vm10, %v1980_v53, %v567_v16  ;;  %v576_v59 = vsel %vm568_vm10, %v567_v16, %v1997_v42  ;;  %800 = vmatpush1.msra.mxu0 %v1760_v38  ;;  %869 = vmatpush1.msra.mxu1 %v662_v51  ;;  %v603_v53 = vmul.f32 %v595_v15, %v575_v2 }
 0x2cb   :  { %v606_v63 = vmul.f32 %v591_v40, %v570_v0  ;;  %v607_v41 = vmul.f32 %v595_v15, %v576_v59  ;;  %801 = vmatprep.subr.mxu0 %v1667_v20  ;;  %870 = vmatprep.subr.mxu1 %v659_v56  ;;  %v602_v60 = vmul.f32 %v591_v40, %v569_v37  ;;  %v2130_v56 = vld [vmem:[%s2376_s11 + $0x1] ss:$8 sm:$0xf] }
 0x2cc   :  { %802 = vmatpush1.msra.mxu0 %v1665_v19  ;;  %871 = vmatpush1.msra.mxu1 %v658_v4  ;;  %v527_v20 = vrot.slane %v1441_v44, %v1969_v23  ;;  %v751_v16 = vrot.slane %v1727_v26, %v1969_v23  ;;  %v546_v4 = vmul.f32 %v535_v49, %v1902_v22 }
 0x2cd   :  { %v499_v42 = vpop.permute.xlu1 %498  ;;  %872 = vmatprep.subr.mxu1 %v607_v41  ;;  %v2083_v38 = vpop.permute.xlu0 %398  ;;  %v419_v0 = vrot.slane %v2130_v56, %v1722_v25  ;;  %v415_v59 = vrot.slane %v2130_v56, %v1969_v23 }
 0x2ce   :  { %v518_v54 = vsel %vm512_vm5, %v499_v42, %v2015_v12  ;;  %873 = vmatpush1.msra.mxu1 %v606_v63  ;;  %v544_v27 = vmul.f32 %v527_v20, %v519_v57  ;;  %v405_v63 = vsel %vm400_vm7, %v1904_v7, %v1909_v28 }
 0x2cf   :  { %v549_v62 = vmul.f32 %v531_v36, %v518_v54  ;;  %874 = vmatprep.subr.mxu1 %v603_v53  ;;  %v407_v53 = vsel %vm400_vm7, %v1923_v32, %v1904_v7  ;;  %v483_v54 = vrot.slane %v1440_v50, %v1995_v35  ;;  %v2174_v7 = vrot.slane %v1727_v26, %v1992_v48 }
 0x2d0   :  { %875 = vmatpush1.msra.mxu1 %v602_v60  ;;  %v479_v60 = vrot.slane %v1440_v50, %v1992_v48  ;;  %v432_v32 = vmul.f32 %v415_v59, %v407_v53 }
 0x2d1   :  { %v511_v19 = vpop.permute.xlu1 %510  ;;  %803 = vmatprep.subr.mxu0 %v549_v62  ;;  %876 = vmatprep.subr.mxu1 %v1775_v21  ;;  %v2090_v31 = vpop.permute.xlu0 %333  ;;  %v545_v21 = vmul.f32 %v531_v36, %v1887_v6  ;;  %v463_v6 = vsel %vm456_vm6, %v1906_v9, %v1889_v13  ;;  %v433_v62 = vmul.f32 %v419_v0, %v405_v63 }
 0x2d2   :  { %v520_v55 = vsel %vm512_vm5, %v511_v19, %v499_v42  ;;  %877 = vmatpush1.msra.mxu1 %v1754_v11  ;;  %v461_v11 = vsel %vm456_vm6, %v1889_v13, %v1893_v17  ;;  %v539_v17 = vrot.slane %v1441_v44, %v1995_v35  ;;  %v488_v40 = vmul.f32 %v471_v5, %v463_v6 }
 0x2d3   :  { %v548_v24 = vmul.f32 %v527_v20, %v520_v55  ;;  %878 = vmatprep.subr.mxu1 %v1684_v10  ;;  %v489_v58 = vmul.f32 %v475_v47, %v461_v11  ;;  %v354_v20 = vld [vmem:[%s2376_s11] ss:$8 sm:$0xf]  ;;  %v491_v11 = vmul.f32 %v483_v54, %v1914_v29 }
 0x2d4   :  { %879 = vmatpush1.msra.mxu1 %v1674_v8  ;;  %v547_v44 = vmul.f32 %v539_v17, %v1898_v18 }
 0x2d5   :  { %v443_v14 = vpop.permute.xlu1 %442  ;;  %804 = vmatpush1.msra.mxu0 %v548_v24  ;;  %v2107_v52 = vpop.permute.xlu0 %341 }
 0x2d6   :  { %v462_v10 = vsel %vm456_vm6, %v443_v14, %v2028_v3  ;;  %v464_v8 = vsel %vm456_vm6, %v2047_v61, %v443_v14  ;;  %805 = vmatprep.subr.mxu0 %v545_v21  ;;  %v359_v14 = vrot.slane %v354_v20, %v1969_v23 }
 0x2d7   :  { %v492_v46 = vmul.f32 %v471_v5, %v464_v8  ;;  %v493_v33 = vmul.f32 %v475_v47, %v462_v10  ;;  %806 = vmatpush1.msra.mxu0 %v544_v27  ;;  %v2189_v5 = vrot.slane %v1727_v26, %v1995_v35  ;;  %v2413_v8 = vld [vmem:[#allocation13_spill] sm:$0xff] }
 0x2d9   :  { %v507_v51 = vpop.permute.xlu1 %506  ;;  %807 = vmatprep.subr.mxu0 %v493_v33  ;;  %v2125_v39 = vpop.permute.xlu0 %726 }
 0x2da   :  { %v514_v13 = vsel %vm512_vm5, %v507_v51, %v511_v19  ;;  %v516_v9 = vsel %vm512_vm5, %v2015_v12, %v507_v51  ;;  %808 = vmatpush1.msra.mxu0 %v492_v46  ;;  %v423_v51 = vrot.slane %v2130_v56, %v1992_v48 }
 0x2db   :  { %v550_v15 = vmul.f32 %v535_v49, %v516_v9  ;;  %v551_v2 = vmul.f32 %v539_v17, %v514_v13  ;;  %809 = vmatprep.subr.mxu0 %v489_v58 }
 0x2dc   :  { %810 = vmatpush1.msra.mxu0 %v488_v40  ;;  %v427_v40 = vrot.slane %v2130_v56, %v1995_v35  ;;  %v367_v56 = vrot.slane %v354_v20, %v1992_v48  ;;  %v2417_v48 = vld [vmem:[#allocation15_spill] sm:$0xff] }
 0x2dd   :  { %v387_v37 = vpop.permute.xlu1 %386  ;;  %880 = vmatprep.subr.mxu1 %v551_v2  ;;  %v2145_v12 = vpop.permute.xlu0 %722 }
 0x2de   :  { %v406_v22 = vsel %vm400_vm7, %v387_v37, %v2063_v1  ;;  %v408_v18 = vsel %vm400_vm7, %v2083_v38, %v387_v37  ;;  %v742_v41 = vsel %vm736_vm9, %v2145_v12, %v2125_v39  ;;  %881 = vmatpush1.msra.mxu1 %v550_v15  ;;  %v371_v37 = vrot.slane %v354_v20, %v1995_v35 }
 0x2df   :  { %v436_v28 = vmul.f32 %v415_v59, %v408_v18  ;;  %v437_v36 = vmul.f32 %v419_v0, %v406_v22  ;;  %v2165_v42 = vmul.f32 %v751_v16, %v742_v41  ;;  %882 = vmatprep.subr.mxu1 %v547_v44  ;;  %v2415_v0 = vld [vmem:[#allocation11_spill] sm:$0xff]  ;;  %v2416_v22 = vld [vmem:[#allocation12_spill] sm:$0xff] }
 0x2e0   :  { %883 = vmatpush1.msra.mxu1 %v546_v4  ;;  %v435_v59 = vmul.f32 %v427_v40, %v2415_v0  ;;  %v434_v18 = vmul.f32 %v423_v51, %v2416_v22 }
 0x2e1   :  { %v451_v19 = vpop.permute.xlu1 %450  ;;  %811 = vmatprep.subr.mxu0 %v437_v36  ;;  %v721_v57 = vpop.permute.xlu0 %720  ;;  %v2418_v36 = vld [vmem:[#allocation14_spill] sm:$0xff] }
 0x2e2   :  { %v458_v55 = vsel %vm456_vm6, %v451_v19, %v2047_v61  ;;  %v460_v50 = vsel %vm456_vm6, %v2028_v3, %v451_v19  ;;  %v741_v24 = vsel %vm736_vm9, %v721_v57, %v1954_v45  ;;  %812 = vmatpush1.msra.mxu0 %v436_v28  ;;  %v363_v61 = vrot.slane %v354_v20, %v1722_v25  ;;  %v2412_v45 = vld [vmem:[#allocation10_spill] sm:$0xff] }
 0x2e3   :  { %v494_v21 = vmul.f32 %v479_v60, %v460_v50  ;;  %v495_v27 = vmul.f32 %v483_v54, %v458_v55  ;;  %v2185_v47 = vmul.f32 %v751_v16, %v741_v24  ;;  %813 = vmatprep.subr.mxu0 %v433_v62  ;;  %v490_v3 = vmul.f32 %v479_v60, %v1919_v30  ;;  %v2414_v30 = vld [vmem:[#allocation16_spill] sm:$0xff]  ;;  %v2420_v55 = vld [vmem:[#allocation17_spill] sm:$0xff]  ;;  %v779_v50 = vld [vmem:[%s2377_s4 + $0x18] sm:$0xff] }
 0x2e4   :  { %814 = vmatpush1.msra.mxu0 %v432_v32  ;;  %v350_v10 = vsel %vm345_vm8, %v2412_v45, %v1926_v34  ;;  %v352_v26 = vsel %vm345_vm8, %v2413_v8, %v2412_v45  ;;  %v379_v28 = vmul.f32 %v371_v37, %v2417_v48  ;;  %v378_v60 = vmul.f32 %v367_v56, %v2418_v36  ;;  %v2423_v48 = vld [vmem:[#allocation6_spill] sm:$0xff] }
 0x2e5   :  { %v330_v6 = vpop.permute.xlu1 %329  ;;  %884 = vmatprep.subr.mxu1 %v495_v27  ;;  %v733_v25 = vpop.permute.xlu0 %732  ;;  %v377_v13 = vmul.f32 %v363_v61, %v350_v10  ;;  %v376_v15 = vmul.f32 %v359_v14, %v352_v26 }
 0x2e6   :  { %v351_v23 = vsel %vm345_vm8, %v330_v6, %v2090_v31  ;;  %v353_v29 = vsel %vm345_vm8, %v2107_v52, %v330_v6  ;;  %v737_v34 = vsel %vm736_vm9, %v2414_v30, %v733_v25  ;;  %v743_v46 = vsel %vm736_vm9, %v733_v25, %v721_v57  ;;  %885 = vmatpush1.msra.mxu1 %v494_v21 }
 0x2e7   :  { %v380_v33 = vmul.f32 %v359_v14, %v353_v29  ;;  %v381_v49 = vmul.f32 %v363_v61, %v351_v23  ;;  %v770_v17 = vmul.f32 %v2174_v7, %v737_v34  ;;  %v771_v58 = vmul.f32 %v2189_v5, %v743_v46  ;;  %886 = vmatprep.subr.mxu1 %v491_v11 }
 0x2e8   :  { %887 = vmatpush1.msra.mxu1 %v490_v3 }
 0x2e9   :  { %v395_v9 = vpop.permute.xlu1 %394  ;;  %815 = vmatprep.subr.mxu0 %v381_v49 }
 0x2ea   :  { %v402_v2 = vsel %vm400_vm7, %v395_v9, %v2083_v38  ;;  %v404_v16 = vsel %vm400_vm7, %v2063_v1, %v395_v9  ;;  %816 = vmatpush1.msra.mxu0 %v380_v33 }
 0x2eb   :  { %v438_v4 = vmul.f32 %v423_v51, %v404_v16  ;;  %v439_v44 = vmul.f32 %v427_v40, %v402_v2  ;;  %817 = vmatprep.subr.mxu0 %v377_v13 }
 0x2ec   :  { %818 = vmatpush1.msra.mxu0 %v376_v15 }
 0x2ed   :  { %v338_v63 = vpop.permute.xlu1 %337  ;;  %888 = vmatprep.subr.mxu1 %v439_v44 }
 0x2ee   :  { %v347_v38 = vsel %vm345_vm8, %v338_v63, %v2107_v52  ;;  %v349_v1 = vsel %vm345_vm8, %v2090_v31, %v338_v63  ;;  %889 = vmatpush1.msra.mxu1 %v438_v4  ;;  %v2419_v52 = vld [vmem:[#allocation9_spill] sm:$0xff] }
 0x2ef   :  { %v382_v41 = vmul.f32 %v367_v56, %v349_v1  ;;  %v383_v53 = vmul.f32 %v371_v37, %v347_v38  ;;  %890 = vmatprep.subr.mxu1 %v435_v59  ;;  %v2422_v1 = vld [vmem:[#allocation5_spill] sm:$0xff] }
 0x2f0   :  { %891 = vmatpush1.msra.mxu1 %v434_v18 }
 0x2f1   :  { %v731_v35 = vpop.permute.xlu1 %730  ;;  %892 = vmatprep.subr.mxu1 %v383_v53 }
 0x2f2   :  { %v740_v54 = vsel %vm736_vm9, %v2125_v39, %v731_v35  ;;  %893 = vmatpush1.msra.mxu1 %v382_v41  ;;  %v776_v39 = vld [vmem:[%s2377_s4] sm:$0xff] }
 0x2f3   :  { %v773_v62 = vmul.f32 %v2419_v52, %v740_v54  ;;  %894 = vmatprep.subr.mxu1 %v379_v28  ;;  %v2425_v52 = vld [vmem:[#allocation7_spill] sm:$0xff] }
 0x2f4   :  { %895 = vmatpush1.msra.mxu1 %v378_v60  ;;  %v2424_v60 = vld [vmem:[#allocation8_spill] sm:$0xff] }
 0x2f5   :  { %v735_v31 = vpop.permute.xlu1 %734  ;;  %847 = vmatprep.subr.mxu0 %v773_v62 }
 0x2f6   :  { %v738_v20 = vsel %vm736_vm9, %v731_v35, %v735_v31  ;;  %v744_v19 = vsel %vm736_vm9, %v735_v31, %v2145_v12  ;;  %848 = vmatpush2.msra.mxu0 %v2165_v42  ;;  %v2421_v12 = vmov 0.0  }
 0x2f7   :  { %v774_v57 = vmul.f32 %v2174_v7, %v738_v20  ;;  %v775_v32 = vmul.f32 %v2189_v5, %v744_v19  ;;  %849 = vmatprep.subr.mxu0 %v2420_v55 }
 0x2f8   :  { %850 = vmatpush2.msra.mxu0 %v2185_v47 }
 0x2f9   :  { %852 = vmatmul.mubr.f32.vlgmr.msra.gmra.mxu0 %v776_v39  ;;  %924 = vmatprep.subr.mxu1 %v775_v32 }
 0x2fa   :  { %925 = vmatpush2.msra.mxu1 %v774_v57  ;;  %1447 = vmatprep.mubr.msk.f32.mxu0 %vm780_vm3, %v779_v50 }
 0x2fb   :  { %926 = vmatprep.subr.mxu1 %v771_v58 }
 0x2fc   :  { %927 = vmatpush2.msra.mxu1 %v770_v17 }
 0x2fd   :  { %858 = vmatmul.mubr.f32.gmra.mxu0 %v778_v43  ;;  %929 = vmatmul.mubr.f32.vlgmr.msra.gmra.mxu1 %v776_v39 }
 0x2fe   :  { %1449 = vmatprep.mubr.msk.f32.mxu1 %vm780_vm3, %v779_v50  ;;  %1107 = vmatprep.mubr.f32.mxu0 %v2421_v12 }
 0x301   :  { %935 = vmatmul.mubr.f32.gmra.mxu1 %v778_v43 }
 0x302   :  { %1178 = vmatprep.mubr.f32.mxu1 %v2421_v12 }
 0x3b9   :  { %v2265_v42 = vpop.f32.mrf.mxu0 }
 0x3ba   :  { %v951_v5 = vmul.f32 %v2265_v42, %v2265_v42 }
 0x3bb   :  { %v2267_v7 = vpop.f32.mrf.mxu0 }
 0x3bc   :  { %v941_v24 = vadd.f32 %v2267_v7, %v2265_v42  ;;  %v952_v21 = vmul.f32 %v2267_v7, %v2267_v7 }
 0x3bd   :  { %v859_v27 = vpop.f32.mrf.mxu0  ;;  %v930_v47 = vpop.f32.mrf.mxu1 }
 0x3be   :  { %v942_v61 = vadd.f32 %v941_v24, %v930_v47  ;;  %v955_v14 = vmul.f32 %v859_v27, %v859_v27  ;;  %v953_v3 = vmul.f32 %v930_v47, %v930_v47  ;;  %v959_v6 = vadd.f32 %v952_v21, %v951_v5 }
 0x3bf   :  { %v861_v11 = vpop.f32.mrf.mxu0  ;;  %v932_v45 = vpop.f32.mrf.mxu1 }
 0x3c0   :  { %v946_v10 = vadd.f32 %v861_v11, %v859_v27  ;;  %v956_v8 = vmul.f32 %v861_v11, %v861_v11  ;;  %v943_v26 = vadd.f32 %v942_v61, %v932_v45  ;;  %v954_v46 = vmul.f32 %v932_v45, %v932_v45 }
 0x3c1   :  { %v936_v25 = vpop.f32.mrf.mxu1  ;;  %v960_v58 = vadd.f32 %v959_v6, %v953_v3 }
 0x3c2   :  { %v957_v23 = vmul.f32 %v936_v25, %v936_v25  ;;  %944 = vadd.xlane.f32.xlu0 %v943_v26  ;;  %v947_v29 = vadd.f32 %v946_v10, %v936_v25  ;;  %v964_v30 = vadd.f32 %v956_v8, %v955_v14 }
 0x3c3   :  { %v938_v34 = vpop.f32.mrf.mxu1  ;;  %v961_v40 = vadd.f32 %v960_v58, %v954_v46 }
 0x3c4   :  { %v948_v33 = vadd.f32 %v947_v29, %v938_v34  ;;  %v958_v49 = vmul.f32 %v938_v34, %v938_v34  ;;  %v965_v17 = vadd.f32 %v964_v30, %v957_v23 }
 0x3c6   :  { %949 = vadd.xlane.f32.xlu1 %v948_v33  ;;  %v966_v51 = vadd.f32 %v965_v17, %v958_v49 }
 0x3c8   :  { %967 = vadd.xlane.f32.xlu0 %v966_v51 }
 0x3ca   :  { %962 = vadd.xlane.f32.xlu1 %v961_v40  ;;  %v1039_v40 = vld [vmem:[%s2378_s5] sm:$0xff] }
 0x44b   :  { %v945_v13 = vpop.xlane.xlu0 %944 }
 0x44c   :  { %v969_v15 = vmul.f32 0.001953125, %v945_v13  ;;  %v2426_v13 = vld [vmem:[#allocation3_spill] sm:$0xff] }
 0x44e   :  { %v973_v59 = vmul.f32 %v969_v15, %v969_v15 }
 0x44f   :  { %v950_v9 = vpop.xlane.xlu1 %949 }
 0x450   :  { %v970_v2 = vmul.f32 0.001953125, %v950_v9  ;;  %v1486_v9 = vld [vmem:[%s2371_s0] sm:$0xff] }
 0x451   :  { %v968_v16 = vpop.xlane.xlu0 %967 }
 0x452   :  { %v974_v4 = vmul.f32 %v970_v2, %v970_v2  ;;  %v972_v44 = vmul.f32 0.001953125, %v968_v16  ;;  %v1487_v16 = vld [vmem:[%s2371_s0 + $0x8] sm:$0xff] }
 0x453   :  { %v963_v0 = vpop.xlane.xlu1 %962 }
 0x454   :  { %v976_v56 = vsub.f32 %v972_v44, %v974_v4  ;;  %v971_v37 = vmul.f32 0.001953125, %v963_v0 }
 0x456   :  { %v978_v63 = vadd.f32 1e-05, %v976_v56  ;;  %v975_v22 = vsub.f32 %v971_v37, %v973_v59 }
 0x458   :  { %1478 = vrsqrt.f32 %v978_v63  ;;  %v977_v18 = vadd.f32 1e-05, %v975_v22 }
 0x45a   :  { %1480 = vrsqrt.f32 %v977_v18 }
 0x465   :  { %v1479_v38 = vpop.eup %1478 }
 0x466   :  { %v982_v41 = vmul.f32 %v1479_v38, %v2422_v1 }
 0x467   :  { %v1481_v53 = vpop.eup %1480 }
 0x468   :  { %994 = vperm.xlu0 %1471, %v982_v41   ;;  %v981_v28 = vmul.f32 %v1481_v53, %v2423_v48  ;;  %v984_v35 = vmul.f32 %v982_v41, %v970_v2  ;;  %v2427_v2 = vld [vmem:[#allocation4_spill] sm:$0xff] }
 0x46a   :  { %989 = vperm.xlu1 %1470, %v981_v28   ;;  %v983_v36 = vmul.f32 %v981_v28, %v969_v15  ;;  %v986_v54 = vsub.f32 %v2424_v60, %v984_v35  ;;  %v1228_v15 = vld [vmem:[%s2379_s8] sm:$0xff] }
 0x46c   :  { %v985_v62 = vsub.f32 %v2425_v52, %v983_v36 }
 0x46e   :  { %1012 = vperm.xlu1 %1470, %v986_v54   ;;  %1007 = vperm.xlu0 %1471, %v985_v62  }
 0x4e3   :  { %v995_v31 = vpop.permute.xlu0 %994 }
 0x4e4   :  { %v1001_v19 = vmul.f32 %v995_v31, %v859_v27  ;;  %v1003_v39 = vmul.f32 %v995_v31, %v936_v25  ;;  %v1002_v55 = vmul.f32 %v995_v31, %v861_v11  ;;  %v1004_v50 = vmul.f32 %v995_v31, %v938_v34 }
 0x4e5   :  { %v990_v20 = vpop.permute.xlu1 %989 }
 0x4e6   :  { %v997_v57 = vmul.f32 %v990_v20, %v2265_v42  ;;  %v999_v32 = vmul.f32 %v990_v20, %v930_v47  ;;  %v998_v43 = vmul.f32 %v990_v20, %v2267_v7  ;;  %v1000_v24 = vmul.f32 %v990_v20, %v932_v45 }
 0x4e9   :  { %v1013_v21 = vpop.permute.xlu1 %1012  ;;  %v1008_v5 = vpop.permute.xlu0 %1007 }
 0x4ea   :  { %v1019_v61 = vadd.f32 %v1013_v21, %v1001_v19  ;;  %v1021_v14 = vadd.f32 %v1013_v21, %v1003_v39  ;;  %v1015_v3 = vadd.f32 %v1008_v5, %v997_v57  ;;  %v1017_v10 = vadd.f32 %v1008_v5, %v999_v32 }
 0x4eb   :  { %v1020_v8 = vadd.f32 %v1013_v21, %v1002_v55  ;;  %v1022_v26 = vadd.f32 %v1013_v21, %v1004_v50  ;;  %v1016_v6 = vadd.f32 %v1008_v5, %v998_v43  ;;  %v1018_v23 = vadd.f32 %v1008_v5, %v1000_v24 }
 0x4ec   :  { %v1027_v27 = vmax.f32 %v1019_v61, 0.0  ;;  %v1029_v25 = vmax.f32 %v1021_v14, 0.0  ;;  %v1023_v7 = vmax.f32 %v1015_v3, 0.0  ;;  %v1025_v45 = vmax.f32 %v1017_v10, 0.0 }
 0x4ed   :  { %v1028_v29 = vmax.f32 %v1020_v8, 0.0  ;;  %v1030_v42 = vmax.f32 %v1022_v26, 0.0  ;;  %v1024_v47 = vmax.f32 %v1016_v6, 0.0  ;;  %v1026_v11 = vmax.f32 %v1018_v23, 0.0 }
 0x4ee   :  { %v1035_v30 = vmin.f32 %v1027_v27, 6.0  ;;  %v1037_v34 = vmin.f32 %v1029_v25, 6.0  ;;  %v1031_v58 = vmin.f32 %v1023_v7, 6.0  ;;  %v1033_v51 = vmin.f32 %v1025_v45, 6.0  ;;  %v1392_v27 = vld [vmem:[%s2380_s9] sm:$0xff] }
 0x4ef   :  { %v1036_v46 = vmin.f32 %v1028_v29, 6.0  ;;  %v1038_v33 = vmin.f32 %v1030_v42, 6.0  ;;  %v1032_v49 = vmin.f32 %v1024_v47, 6.0  ;;  %v1034_v17 = vmin.f32 %v1026_v11, 6.0  ;;  %v1203_v29 = vld [vmem:[%s2381_s6] sm:$0xff] }
 0x4f0   :  { %v1396_v7 = vld [vmem:[%s2383_s10] sm:$0xff] }
 0x4f1   :  { %1071 = vmatprep.subr.mxu0 %v1036_v46  ;;  %1142 = vmatprep.subr.mxu1 %v1038_v33 }
 0x4f2   :  { %1072 = vmatpush1.msra.mxu0 %v1035_v30  ;;  %1143 = vmatpush1.msra.mxu1 %v1037_v34  ;;  %v1207_v34 = vld [vmem:[%s2382_s7] sm:$0xff] }
 0x4f3   :  { %1073 = vmatprep.subr.mxu0 %v1032_v49  ;;  %1144 = vmatprep.subr.mxu1 %v1034_v17 }
 0x4f4   :  { %1074 = vmatpush1.msra.mxu0 %v1031_v58  ;;  %1145 = vmatpush1.msra.mxu1 %v1033_v51 }
 0x4f5   :  { %1450 = vmatmul.mubr.msk.f32.vlgmr.msra.gmra.mxu0 %vm780_vm3, %v1039_v40  ;;  %1452 = vmatprep.subr.msk.mxu0 %vm62_vm0, %v2426_v13 }
 0x4f6   :  { %1453 = vmatpush1.msk.msra.mxu0 %vm62_vm0, %v1486_v9  ;;  %1296 = vmatprep.mubr.f32.mxu0 %v2421_v12 }
 0x4f7   :  { %1451 = vmatmul.mubr.msk.f32.vlgmr.msra.gmra.mxu1 %vm780_vm3, %v1039_v40  ;;  %1455 = vmatprep.subr.msk.mxu1 %vm62_vm0, %v2427_v2 }
 0x4f8   :  { %1456 = vmatpush1.msk.msra.mxu1 %vm62_vm0, %v1487_v16  ;;  %1367 = vmatprep.mubr.f32.mxu1 %v2421_v12 }
 0x4f9   :  { %1454 = vmatmul.mubr.msk.f32.vlgmr.msra.gmra.mxu0 %vm55_vm1, %v1228_v15 }
 0x4fb   :  { %1457 = vmatmul.mubr.msk.f32.vlgmr.msra.gmra.mxu1 %vm55_vm1, %v1228_v15 }
 0x5b5   :  { %v2305_v4 = vpop.f32.mrf.mxu0 }
 0x5b6   :  { %v1190_v37 = vmul.f32 %v2305_v4, %v2305_v4 }
 0x5b7   :  { %v2307_v44 = vpop.f32.mrf.mxu0  ;;  %v2309_v0 = vpop.f32.mrf.mxu1 }
 0x5b8   :  { %v1185_v59 = vadd.f32 %v2307_v44, %v2305_v4  ;;  %v1191_v56 = vmul.f32 %v2307_v44, %v2307_v44  ;;  %v1192_v18 = vmul.f32 %v2309_v0, %v2309_v0 }
 0x5b9   :  { %v2317_v12 = vpop.f32.mrf.mxu0  ;;  %v2319_v63 = vpop.f32.mrf.mxu1 }
 0x5ba   :  { %v1186_v22 = vadd.f32 %v1185_v59, %v2309_v0  ;;  %v1379_v38 = vmul.f32 %v2317_v12, %v2317_v12  ;;  %v1194_v53 = vadd.f32 %v1191_v56, %v1190_v37  ;;  %v1193_v57 = vmul.f32 %v2319_v63, %v2319_v63 }
 0x5bb   :  { %v2326_v1 = vpop.f32.mrf.mxu0  ;;  %v2328_v41 = vpop.f32.mrf.mxu1 }
 0x5bc   :  { %v1374_v48 = vadd.f32 %v2326_v1, %v2317_v12  ;;  %v1380_v28 = vmul.f32 %v2326_v1, %v2326_v1  ;;  %v1381_v35 = vmul.f32 %v2328_v41, %v2328_v41  ;;  %v1187_v36 = vadd.f32 %v1186_v22, %v2319_v63 }
 0x5bd   :  { %v1371_v60 = vpop.f32.mrf.mxu1  ;;  %v1195_v19 = vadd.f32 %v1194_v53, %v1192_v18 }
 0x5be   :  { %v1383_v54 = vadd.f32 %v1380_v28, %v1379_v38  ;;  %1188 = vadd.xlane.f32.xlu1 %v1187_v36  ;;  %v1375_v52 = vadd.f32 %v1374_v48, %v2328_v41  ;;  %v1382_v62 = vmul.f32 %v1371_v60, %v1371_v60 }
 0x5bf   :  { %v1196_v32 = vadd.f32 %v1195_v19, %v1193_v57 }
 0x5c0   :  { %v1376_v31 = vadd.f32 %v1375_v52, %v1371_v60  ;;  %v1384_v20 = vadd.f32 %v1383_v54, %v1381_v35 }
 0x5c2   :  { %1377 = vadd.xlane.f32.xlu0 %v1376_v31  ;;  %v1385_v39 = vadd.f32 %v1384_v20, %v1382_v62 }
 0x5c4   :  { %1386 = vadd.xlane.f32.xlu1 %v1385_v39 }
 0x5c6   :  { %1197 = vadd.xlane.f32.xlu0 %v1196_v32 }
 0x647   :  { %v1189_v55 = vpop.xlane.xlu1 %1188 }
 0x648   :  { %v1199_v43 = vmul.f32 0.001953125, %v1189_v55 }
 0x64a   :  { %v1201_v3 = vmul.f32 %v1199_v43, %v1199_v43 }
 0x64b   :  { %v1378_v50 = vpop.xlane.xlu0 %1377 }
 0x64c   :  { %v1388_v24 = vmul.f32 0.001953125, %v1378_v50 }
 0x64d   :  { %v1387_v21 = vpop.xlane.xlu1 %1386 }
 0x64e   :  { %v1390_v5 = vmul.f32 %v1388_v24, %v1388_v24  ;;  %v1389_v61 = vmul.f32 0.001953125, %v1387_v21 }
 0x64f   :  { %v1198_v14 = vpop.xlane.xlu0 %1197 }
 0x650   :  { %v1391_v10 = vsub.f32 %v1389_v61, %v1390_v5  ;;  %v1200_v8 = vmul.f32 0.001953125, %v1198_v14 }
 0x652   :  { %v1393_v26 = vadd.f32 1e-05, %v1391_v10  ;;  %v1202_v6 = vsub.f32 %v1200_v8, %v1201_v3 }
 0x654   :  { %1482 = vrsqrt.f32 %v1393_v26  ;;  %v1204_v23 = vadd.f32 1e-05, %v1202_v6 }
 0x656   :  { %1484 = vrsqrt.f32 %v1204_v23 }
 0x661   :  { %v1483_v25 = vpop.eup %1482 }
 0x662   :  { %v1395_v42 = vmul.f32 %v1483_v25, %v1392_v27 }
 0x663   :  { %v1485_v47 = vpop.eup %1484 }
 0x664   :  { %1401 = vperm.xlu1 %1470, %v1395_v42   ;;  %v1206_v11 = vmul.f32 %v1485_v47, %v1203_v29  ;;  %v1397_v30 = vmul.f32 %v1395_v42, %v1388_v24 }
 0x666   :  { %1212 = vperm.xlu0 %1471, %v1206_v11   ;;  %v1208_v45 = vmul.f32 %v1206_v11, %v1199_v43  ;;  %v1398_v33 = vsub.f32 %v1396_v7, %v1397_v30 }
 0x668   :  { %v1209_v46 = vsub.f32 %v1207_v34, %v1208_v45 }
 0x66a   :  { %1221 = vperm.xlu1 %1470, %v1209_v46   ;;  %1410 = vperm.xlu0 %1471, %v1398_v33  }
 0x6df   :  { %v1402_v49 = vpop.permute.xlu1 %1401 }
 0x6e0   :  { %v1404_v15 = vmul.f32 %v1402_v49, %v2317_v12  ;;  %v1405_v2 = vmul.f32 %v1402_v49, %v2326_v1  ;;  %v1406_v16 = vmul.f32 %v1402_v49, %v2328_v41  ;;  %v1407_v59 = vmul.f32 %v1402_v49, %v1371_v60 }
 0x6e1   :  { %v1213_v17 = vpop.permute.xlu0 %1212 }
 0x6e2   :  { %v1215_v58 = vmul.f32 %v1213_v17, %v2305_v4  ;;  %v1216_v51 = vmul.f32 %v1213_v17, %v2307_v44  ;;  %v1217_v40 = vmul.f32 %v1213_v17, %v2309_v0  ;;  %v1218_v13 = vmul.f32 %v1213_v17, %v2319_v63 }
 0x6e5   :  { %v1222_v9 = vpop.permute.xlu1 %1221  ;;  %v1411_v56 = vpop.permute.xlu0 %1410 }
 0x6e6   :  { %v1224_v37 = vadd.f32 %v1222_v9, %v1215_v58  ;;  %v1225_v22 = vadd.f32 %v1222_v9, %v1216_v51  ;;  %v1226_v18 = vadd.f32 %v1222_v9, %v1217_v40  ;;  %v1227_v38 = vadd.f32 %v1222_v9, %v1218_v13 }
 0x6e7   :  { %v1413_v4 = vadd.f32 %v1411_v56, %v1404_v15  ;;  %v1414_v53 = vadd.f32 %v1411_v56, %v1405_v2  ;;  %v1415_v44 = vadd.f32 %v1411_v56, %v1406_v16  ;;  %v1416_v48 = vadd.f32 %v1411_v56, %v1407_v59 }
 0x6e9   :  { %v1417_v0 = vadd.f32 %v1413_v4, %v1224_v37  ;;  %v1418_v28 = vadd.f32 %v1414_v53, %v1225_v22  ;;  %v1419_v63 = vadd.f32 %v1415_v44, %v1226_v18  ;;  %v1420_v35 = vadd.f32 %v1416_v48, %v1227_v38 }
 0x6eb   :  { %1421 = vst [vmem:[%s2384_s13] sm:$0xff] %v1417_v0  ;;  %1422 = vst [vmem:[%s2384_s13 + $0x8] sm:$0xff] %v1418_v28 }
 0x6ec   :  { %1458 = vst [vmem:[%s2384_s13 + $0x10] sm:$0xff] %v1419_v63  ;;  %1459 = vst [vmem:[%s2384_s13 + $0x18] sm:$0xff] %v1420_v35 }

</bundles_post_ra>
